<compile_context>
chip_gen: v7x
topology: tpu7x:2x2x1
jax: 0.10.0
libtpu: 0.0.40
codegen_flags: <defaults>
</compile_context>

<pallas_src>
import math

import jax
import jax.numpy as jnp
from jax import lax
from jax.experimental import pallas as pl
from jax.experimental.pallas import tpu as pltpu

# ----------------------------- config (synthetic small BERT) -----------------
VOCAB = 100
MAX_POS = 32
TYPE_VOCAB = 2
HIDDEN = 32
HEADS = 2
HEAD_DIM = HIDDEN // HEADS
LAYERS = 2
INTERMEDIATE = 64
NUM_CLASSES = 3
LOGIT_PAD = 128          # lane-dense padded logits slab (last dim = 128)
LN_EPS = 1e-12


# ----------------------------- in-kernel helpers ------------------------------
def _layernorm(x, g, b):
    mean = jnp.mean(x, axis=-1, keepdims=True)
    c = x - mean
    var = jnp.mean(c * c, axis=-1, keepdims=True)
    return c * lax.rsqrt(var + LN_EPS) * g + b


def _gelu(h):
    # TODO(synk): HF BERT uses exact erf-based GELU; tanh approximation kept for
    # robust Mosaic lowering (difference is at the ~1e-3 level).
    c = math.sqrt(2.0 / math.pi)
    return 0.5 * h * (1.0 + jnp.tanh(c * (h + 0.044715 * h * h * h)))


# ----------------------------- fused BERT kernel ------------------------------
def _make_bert_kernel(B, S):
    ROWS = B * S

    def onehot_rows(ids_col, table, vocab):
        # Embedding gather as a one-hot matmul (MXU).  ids_col: [ROWS, 1] int32.
        # TODO(synk): at production vocab sizes (30k+) replace with a DMA /
        # scalar-prefetch row gather instead of a one-hot matmul.
        iota = lax.broadcasted_iota(jnp.int32, (ROWS, vocab), 1)
        onehot = (iota == ids_col).astype(jnp.float32)
        return jnp.dot(onehot, table, preferred_element_type=jnp.float32)

    def kernel(wid_ref, tid_ref, pid_ref, amask_ref,
               wemb_ref, temb_ref, pemb_ref, eg_ref, eb_ref,
               wq_ref, bq_ref, wk_ref, bk_ref, wv_ref, bv_ref,
               wo_ref, bo_ref, ln1g_ref, ln1b_ref,
               w1_ref, b1_ref, w2_ref, b2_ref, ln2g_ref, ln2b_ref,
               wp_ref, bp_ref, wc_ref, bc_ref, o_ref):
        # ---- embeddings (in-kernel gather) + LayerNorm ----
        emb = (onehot_rows(wid_ref[...], wemb_ref[...], VOCAB)
               + onehot_rows(tid_ref[...], temb_ref[...], TYPE_VOCAB)
               + onehot_rows(pid_ref[...], pemb_ref[...], MAX_POS))
        x = _layernorm(emb, eg_ref[...], eb_ref[...])                    # [ROWS, H]

        # Additive attention mask: 0 where attended, -1e9 where masked.
        maskf = (1 - amask_ref[...]).astype(jnp.float32) * (-1e9)        # [B, 1, S]

        # ---- full transformer layers 0 .. LAYERS-2 ----
        def layer_body(l, x):
            attn = jnp.zeros((ROWS, HIDDEN), jnp.float32)
            for h in range(HEADS):
                idx = l * HEADS + h
                # scale already folded into wq/bq at pack time
                q = jnp.dot(x, wq_ref[idx], preferred_element_type=jnp.float32) + bq_ref[idx]
                k = jnp.dot(x, wk_ref[idx], preferred_element_type=jnp.float32) + bk_ref[idx]
                v = jnp.dot(x, wv_ref[idx], preferred_element_type=jnp.float32) + bv_ref[idx]
                q3 = q.reshape(B, S, HEAD_DIM)     # tile-aligned sublane split
                k3 = k.reshape(B, S, HEAD_DIM)
                v3 = v.reshape(B, S, HEAD_DIM)
                s = jnp.einsum("bqd,bkd->bqk", q3, k3,
                               preferred_element_type=jnp.float32) + maskf
                p = jnp.exp(s - jnp.max(s, axis=-1, keepdims=True))
                p = p * pl.reciprocal(jnp.sum(p, axis=-1, keepdims=True), approx=True)
                ctx = jnp.einsum("bqk,bkd->bqd", p, v3,
                                 preferred_element_type=jnp.float32).reshape(ROWS, HEAD_DIM)
                attn = attn + jnp.dot(ctx, wo_ref[idx], preferred_element_type=jnp.float32)
            attn = attn + bo_ref[l]
            x = _layernorm(attn + x, ln1g_ref[l], ln1b_ref[l])
            h1 = _gelu(jnp.dot(x, w1_ref[l], preferred_element_type=jnp.float32) + b1_ref[l])
            ffn = jnp.dot(h1, w2_ref[l], preferred_element_type=jnp.float32) + b2_ref[l]
            return _layernorm(ffn + x, ln2g_ref[l], ln2b_ref[l])

        x = lax.fori_loop(0, LAYERS - 1, layer_body, x, unroll=True)

        # ---- last layer, peeled: Q / out-proj / LN / FFN only on CLS rows ----
        lL = LAYERS - 1
        x_cls = jnp.concatenate([x[b * S:b * S + 1, :] for b in range(B)], axis=0)   # [B, H]
        attn = jnp.zeros((B, HIDDEN), jnp.float32)
        for h in range(HEADS):
            idx = lL * HEADS + h
            q = jnp.dot(x_cls, wq_ref[idx], preferred_element_type=jnp.float32) + bq_ref[idx]  # [B, D]
            k = jnp.dot(x, wk_ref[idx], preferred_element_type=jnp.float32) + bk_ref[idx]      # [ROWS, D]
            v = jnp.dot(x, wv_ref[idx], preferred_element_type=jnp.float32) + bv_ref[idx]
            ctx_rows = []
            for b in range(B):
                q_b = q[b:b + 1, :]                                      # [1, D]
                k_b = k[b * S:(b + 1) * S, :]                            # [S, D]
                v_b = v[b * S:(b + 1) * S, :]
                s = lax.dot_general(q_b, k_b, (((1,), (1,)), ((), ())),
                                    preferred_element_type=jnp.float32) + maskf[b]   # [1, S]
                p = jnp.exp(s - jnp.max(s, axis=-1, keepdims=True))
                p = p * pl.reciprocal(jnp.sum(p, axis=-1, keepdims=True), approx=True)
                ctx_rows.append(jnp.dot(p, v_b, preferred_element_type=jnp.float32))  # [1, D]
            ctx = jnp.concatenate(ctx_rows, axis=0)                      # [B, D]
            attn = attn + jnp.dot(ctx, wo_ref[idx], preferred_element_type=jnp.float32)
        attn = attn + bo_ref[lL]
        x_cls = _layernorm(attn + x_cls, ln1g_ref[lL], ln1b_ref[lL])
        h1 = _gelu(jnp.dot(x_cls, w1_ref[lL], preferred_element_type=jnp.float32) + b1_ref[lL])
        ffn = jnp.dot(h1, w2_ref[lL], preferred_element_type=jnp.float32) + b2_ref[lL]
        x_cls = _layernorm(ffn + x_cls, ln2g_ref[lL], ln2b_ref[lL])

        # ---- pooler (tanh) + dropout (identity at inference) + classifier ----
        pooled = jnp.tanh(
            jnp.dot(x_cls, wp_ref[...], preferred_element_type=jnp.float32) + bp_ref[...])
        o_ref[...] = (jnp.dot(pooled, wc_ref[...], preferred_element_type=jnp.float32)
                      + bc_ref[...])                                     # [B, 128] lane-dense

    return kernel


# ----------------------------- parameters ------------------------------------
def init_params(key):
    keys = jax.random.split(key, 32)
    ki = iter(keys)

    def w(shape):
        return jax.random.normal(next(ki), shape, jnp.float32) * 0.02

    params = {
        "word_emb": w((VOCAB, HIDDEN)),
        "pos_emb": w((MAX_POS, HIDDEN)),
        "type_emb": w((TYPE_VOCAB, HIDDEN)),
        "emb_ln_g": jnp.ones((HIDDEN,), jnp.float32),
        "emb_ln_b": jnp.zeros((HIDDEN,), jnp.float32),
        "layers": [],
        "wp": w((HIDDEN, HIDDEN)),
        "bp": jnp.zeros((HIDDEN,), jnp.float32),
        "wc": w((HIDDEN, NUM_CLASSES)),
        "bc": jnp.zeros((NUM_CLASSES,), jnp.float32),
    }
    for _ in range(LAYERS):
        params["layers"].append(
            {
                "wq": w((HIDDEN, HIDDEN)), "bq": jnp.zeros((HIDDEN,), jnp.float32),
                "wk": w((HIDDEN, HIDDEN)), "bk": jnp.zeros((HIDDEN,), jnp.float32),
                "wv": w((HIDDEN, HIDDEN)), "bv": jnp.zeros((HIDDEN,), jnp.float32),
                "wo": w((HIDDEN, HIDDEN)), "bo": jnp.zeros((HIDDEN,), jnp.float32),
                "ln1_g": jnp.ones((HIDDEN,), jnp.float32),
                "ln1_b": jnp.zeros((HIDDEN,), jnp.float32),
                "w1": w((HIDDEN, INTERMEDIATE)),
                "b1": jnp.zeros((INTERMEDIATE,), jnp.float32),
                "w2": w((INTERMEDIATE, HIDDEN)),
                "b2": jnp.zeros((HIDDEN,), jnp.float32),
                "ln2_g": jnp.ones((HIDDEN,), jnp.float32),
                "ln2_b": jnp.zeros((HIDDEN,), jnp.float32),
            }
        )
    return params


def pack_params(params):
    """Head-major weight stacking, QK-scale folding, lane-dense classifier pad."""
    L = params["layers"]
    scale = 1.0 / math.sqrt(HEAD_DIM)

    def heads_in(w):        # [H, HEADS*D] -> [HEADS, H, D]   (Q/K/V weights)
        return jnp.stack([w[:, h * HEAD_DIM:(h + 1) * HEAD_DIM] for h in range(HEADS)], 0)

    def heads_bias(b):      # [HEADS*D] -> [HEADS, 1, D]
        return jnp.stack([b[h * HEAD_DIM:(h + 1) * HEAD_DIM][None, :] for h in range(HEADS)], 0)

    def heads_out(w):       # [HEADS*D, H] -> [HEADS, D, H]   (out-proj split by input rows)
        return jnp.stack([w[h * HEAD_DIM:(h + 1) * HEAD_DIM, :] for h in range(HEADS)], 0)

    def cat_layers(fn, name, mult=1.0):
        return jnp.concatenate([fn(l[name] * mult) for l in L], axis=0)

    def stack_rows(name):
        return jnp.stack([l[name].reshape(1, -1) for l in L], axis=0)

    def stack_mat(name):
        return jnp.stack([l[name] for l in L], axis=0)

    wc_pad = jnp.zeros((HIDDEN, LOGIT_PAD), jnp.float32).at[:, :NUM_CLASSES].set(params["wc"])
    bc_pad = jnp.zeros((1, LOGIT_PAD), jnp.float32).at[:, :NUM_CLASSES].set(params["bc"][None, :])

    return {
        "word_emb": params["word_emb"],
        "type_emb": params["type_emb"],
        "pos_emb": params["pos_emb"],
        "emb_ln_g": params["emb_ln_g"].reshape(1, HIDDEN),
        "emb_ln_b": params["emb_ln_b"].reshape(1, HIDDEN),
        # attention scale folded into the Q projection (weight and bias)
        "wq": cat_layers(heads_in, "wq", scale), "bq": cat_layers(heads_bias, "bq", scale),
        "wk": cat_layers(heads_in, "wk"), "bk": cat_layers(heads_bias, "bk"),
        "wv": cat_layers(heads_in, "wv"), "bv": cat_layers(heads_bias, "bv"),
        "wo": cat_layers(heads_out, "wo"), "bo": stack_rows("bo"),
        "ln1_g": stack_rows("ln1_g"), "ln1_b": stack_rows("ln1_b"),
        "w1": stack_mat("w1"), "b1": stack_rows("b1"),
        "w2": stack_mat("w2"), "b2": stack_rows("b2"),
        "ln2_g": stack_rows("ln2_g"), "ln2_b": stack_rows("ln2_b"),
        "wp": params["wp"], "bp": params["bp"].reshape(1, HIDDEN),
        "wc_pad": wc_pad, "bc_pad": bc_pad,
    }


# ----------------------------- forward pass -----------------------------------
def bert_model_forward(p, input_ids, attention_mask, token_type_ids):
    B, S = input_ids.shape
    wid = input_ids.reshape(B * S, 1).astype(jnp.int32)
    tid = token_type_ids.reshape(B * S, 1).astype(jnp.int32)
    pid = jnp.tile(jnp.arange(S, dtype=jnp.int32), (B,)).reshape(B * S, 1)
    amask = attention_mask.reshape(B, 1, S).astype(jnp.int32)

    kernel = _make_bert_kernel(B, S)
    logits_pad = pl.pallas_call(
        kernel,
        out_shape=jax.ShapeDtypeStruct((B, LOGIT_PAD), jnp.float32),
        compiler_params=pltpu.CompilerParams(vmem_limit_bytes=32 * 1024 * 1024),
    )(
        wid, tid, pid, amask,
        p["word_emb"], p["type_emb"], p["pos_emb"], p["emb_ln_g"], p["emb_ln_b"],
        p["wq"], p["bq"], p["wk"], p["bk"], p["wv"], p["bv"],
        p["wo"], p["bo"], p["ln1_g"], p["ln1_b"],
        p["w1"], p["b1"], p["w2"], p["b2"], p["ln2_g"], p["ln2_b"],
        p["wp"], p["bp"], p["wc_pad"], p["bc_pad"],
    )
    # TODO(synk): at production BERT sizes add a layer-streaming grid
    # (grid=(LAYERS,), "arbitrary") with per-layer weight BlockSpecs for v7x's
    # 64 MiB VMEM, and a "parallel" batch grid axis for its second TensorCore.
    return logits_pad[:, :NUM_CLASSES]   # [B, 3]


# ----------------------------- main -------------------------------------------
if __name__ == "__main__":
    key = jax.random.PRNGKey(0)
    pkey, ikey = jax.random.split(key)

    params = init_params(pkey)
    packed = pack_params(params)

    B, S = 2, 8
    input_ids = jax.random.randint(ikey, (B, S), 0, VOCAB, dtype=jnp.int32)
    attention_mask = jnp.ones((B, S), dtype=jnp.int32)
    token_type_ids = jnp.zeros((B, S), dtype=jnp.int32)

    logits = bert_model_forward(packed, input_ids, attention_mask, token_type_ids)
    logits = jax.block_until_ready(logits)
    assert logits.shape == (B, NUM_CLASSES) and logits.dtype == jnp.float32
    assert bool(jnp.all(jnp.isfinite(logits)))
    print("KERNEL_OK")
</pallas_src>

<mosaic_0001>
module attributes {stable_mosaic.version = 11 : i64} {
  func.func @kernel(%arg0: memref<16x1xi32, #tpu.memory_space<vmem>>, %arg1: memref<16x1xi32, #tpu.memory_space<vmem>>, %arg2: memref<16x1xi32, #tpu.memory_space<vmem>>, %arg3: memref<2x1x8xi32, #tpu.memory_space<vmem>>, %arg4: memref<100x32xf32, #tpu.memory_space<vmem>>, %arg5: memref<2x32xf32, #tpu.memory_space<vmem>>, %arg6: memref<32x32xf32, #tpu.memory_space<vmem>>, %arg7: memref<1x32xf32, #tpu.memory_space<vmem>>, %arg8: memref<1x32xf32, #tpu.memory_space<vmem>>, %arg9: memref<4x32x16xf32, #tpu.memory_space<vmem>>, %arg10: memref<4x1x16xf32, #tpu.memory_space<vmem>>, %arg11: memref<4x32x16xf32, #tpu.memory_space<vmem>>, %arg12: memref<4x1x16xf32, #tpu.memory_space<vmem>>, %arg13: memref<4x32x16xf32, #tpu.memory_space<vmem>>, %arg14: memref<4x1x16xf32, #tpu.memory_space<vmem>>, %arg15: memref<4x16x32xf32, #tpu.memory_space<vmem>>, %arg16: memref<2x1x32xf32, #tpu.memory_space<vmem>>, %arg17: memref<2x1x32xf32, #tpu.memory_space<vmem>>, %arg18: memref<2x1x32xf32, #tpu.memory_space<vmem>>, %arg19: memref<2x32x64xf32, #tpu.memory_space<vmem>>, %arg20: memref<2x1x64xf32, #tpu.memory_space<vmem>>, %arg21: memref<2x64x32xf32, #tpu.memory_space<vmem>>, %arg22: memref<2x1x32xf32, #tpu.memory_space<vmem>>, %arg23: memref<2x1x32xf32, #tpu.memory_space<vmem>>, %arg24: memref<2x1x32xf32, #tpu.memory_space<vmem>>, %arg25: memref<32x32xf32, #tpu.memory_space<vmem>>, %arg26: memref<1x32xf32, #tpu.memory_space<vmem>>, %arg27: memref<32x128xf32, #tpu.memory_space<vmem>>, %arg28: memref<1x128xf32, #tpu.memory_space<vmem>>, %arg29: memref<2x128xf32, #tpu.memory_space<vmem>>) attributes {dimension_semantics = [], scalar_prefetch = 0 : i64, scratch_operands = 0 : i64, tpu.core_type = #tpu.core_type<tc>} {
    %c0 = arith.constant 0 : index
    %c0_0 = arith.constant 0 : index
    %0 = vector.load %arg0[%c0, %c0_0] : memref<16x1xi32, #tpu.memory_space<vmem>>, vector<16x1xi32>
    %c0_1 = arith.constant 0 : index
    %c0_2 = arith.constant 0 : index
    %1 = vector.load %arg4[%c0_1, %c0_2] : memref<100x32xf32, #tpu.memory_space<vmem>>, vector<100x32xf32>
    %2 = tpu.iota {dimensions = array<i32: 1>} : vector<16x100xi32>
    %3 = vector.broadcast %0 : vector<16x1xi32> to vector<16x100xi32>
    %4 = arith.cmpi eq, %2, %3 : vector<16x100xi32>
    %5 = arith.extui %4 : vector<16x100xi1> to vector<16x100xi32>
    %6 = arith.sitofp %5 : vector<16x100xi32> to vector<16x100xf32>
    %cst = arith.constant dense<0.000000e+00> : vector<16x32xf32>
    %7 = tpu.matmul %6, %1, %cst {dimension_numbers = #tpu.dot_dimension_numbers<[1], [0], [0], [1], [0, 0, 1, 1], [], []>} : vector<16x100xf32>, vector<100x32xf32>, vector<16x32xf32> -> vector<16x32xf32>
    %c0_3 = arith.constant 0 : index
    %c0_4 = arith.constant 0 : index
    %8 = vector.load %arg1[%c0_3, %c0_4] : memref<16x1xi32, #tpu.memory_space<vmem>>, vector<16x1xi32>
    %c0_5 = arith.constant 0 : index
    %c0_6 = arith.constant 0 : index
    %9 = vector.load %arg5[%c0_5, %c0_6] : memref<2x32xf32, #tpu.memory_space<vmem>>, vector<2x32xf32>
    %10 = tpu.iota {dimensions = array<i32: 1>} : vector<16x2xi32>
    %11 = vector.broadcast %8 : vector<16x1xi32> to vector<16x2xi32>
    %12 = arith.cmpi eq, %10, %11 : vector<16x2xi32>
    %13 = arith.extui %12 : vector<16x2xi1> to vector<16x2xi32>
    %14 = arith.sitofp %13 : vector<16x2xi32> to vector<16x2xf32>
    %cst_7 = arith.constant dense<0.000000e+00> : vector<16x32xf32>
    %15 = tpu.matmul %14, %9, %cst_7 {dimension_numbers = #tpu.dot_dimension_numbers<[1], [0], [0], [1], [0, 0, 1, 1], [], []>} : vector<16x2xf32>, vector<2x32xf32>, vector<16x32xf32> -> vector<16x32xf32>
    %16 = arith.addf %7, %15 : vector<16x32xf32>
    %c0_8 = arith.constant 0 : index
    %c0_9 = arith.constant 0 : index
    %17 = vector.load %arg2[%c0_8, %c0_9] : memref<16x1xi32, #tpu.memory_space<vmem>>, vector<16x1xi32>
    %c0_10 = arith.constant 0 : index
    %c0_11 = arith.constant 0 : index
    %18 = vector.load %arg6[%c0_10, %c0_11] : memref<32x32xf32, #tpu.memory_space<vmem>>, vector<32x32xf32>
    %19 = tpu.iota {dimensions = array<i32: 1>} : vector<16x32xi32>
    %20 = vector.broadcast %17 : vector<16x1xi32> to vector<16x32xi32>
    %21 = arith.cmpi eq, %19, %20 : vector<16x32xi32>
    %22 = arith.extui %21 : vector<16x32xi1> to vector<16x32xi32>
    %23 = arith.sitofp %22 : vector<16x32xi32> to vector<16x32xf32>
    %cst_12 = arith.constant dense<0.000000e+00> : vector<16x32xf32>
    %24 = tpu.matmul %23, %18, %cst_12 {dimension_numbers = #tpu.dot_dimension_numbers<[1], [0], [0], [1], [0, 0, 1, 1], [], []>} : vector<16x32xf32>, vector<32x32xf32>, vector<16x32xf32> -> vector<16x32xf32>
    %25 = arith.addf %16, %24 : vector<16x32xf32>
    %c0_13 = arith.constant 0 : index
    %c0_14 = arith.constant 0 : index
    %26 = vector.load %arg7[%c0_13, %c0_14] : memref<1x32xf32, #tpu.memory_space<vmem>>, vector<1x32xf32>
    %c0_15 = arith.constant 0 : index
    %c0_16 = arith.constant 0 : index
    %27 = vector.load %arg8[%c0_15, %c0_16] : memref<1x32xf32, #tpu.memory_space<vmem>>, vector<1x32xf32>
    %cst_17 = arith.constant dense<0.000000e+00> : vector<16xf32>
    %28 = vector.multi_reduction <add>, %25, %cst_17 [1] : vector<16x32xf32> to vector<16xf32>
    %29 = vector.shape_cast %28 : vector<16xf32> to vector<16x1xf32>
    %cst_18 = arith.constant 3.200000e+01 : f32
    %30 = vector.broadcast %cst_18 : f32 to vector<16x1xf32>
    %31 = arith.divf %29, %30 : vector<16x1xf32>
    %32 = vector.broadcast %31 : vector<16x1xf32> to vector<16x32xf32>
    %33 = arith.subf %25, %32 : vector<16x32xf32>
    %34 = arith.mulf %33, %33 : vector<16x32xf32>
    %cst_19 = arith.constant dense<0.000000e+00> : vector<16xf32>
    %35 = vector.multi_reduction <add>, %34, %cst_19 [1] : vector<16x32xf32> to vector<16xf32>
    %36 = vector.shape_cast %35 : vector<16xf32> to vector<16x1xf32>
    %cst_20 = arith.constant 3.200000e+01 : f32
    %37 = vector.broadcast %cst_20 : f32 to vector<16x1xf32>
    %38 = arith.divf %36, %37 : vector<16x1xf32>
    %cst_21 = arith.constant 9.99999996E-13 : f32
    %39 = vector.broadcast %cst_21 : f32 to vector<16x1xf32>
    %40 = arith.addf %38, %39 : vector<16x1xf32>
    %41 = math.rsqrt %40 : vector<16x1xf32>
    %42 = vector.broadcast %41 : vector<16x1xf32> to vector<16x32xf32>
    %43 = arith.mulf %33, %42 : vector<16x32xf32>
    %44 = vector.broadcast %26 : vector<1x32xf32> to vector<16x32xf32>
    %45 = arith.mulf %43, %44 : vector<16x32xf32>
    %46 = vector.broadcast %27 : vector<1x32xf32> to vector<16x32xf32>
    %47 = arith.addf %45, %46 : vector<16x32xf32>
    %c0_22 = arith.constant 0 : index
    %c0_23 = arith.constant 0 : index
    %c0_24 = arith.constant 0 : index
    %48 = vector.load %arg3[%c0_22, %c0_23, %c0_24] : memref<2x1x8xi32, #tpu.memory_space<vmem>>, vector<2x1x8xi32>
    %c1_i32 = arith.constant 1 : i32
    %49 = vector.broadcast %c1_i32 : i32 to vector<2x1x8xi32>
    %50 = arith.subi %49, %48 : vector<2x1x8xi32>
    %51 = arith.sitofp %50 : vector<2x1x8xi32> to vector<2x1x8xf32>
    %cst_25 = arith.constant -1.000000e+09 : f32
    %52 = vector.broadcast %cst_25 : f32 to vector<2x1x8xf32>
    %53 = arith.mulf %51, %52 : vector<2x1x8xf32>
    %c0_i32 = arith.constant 0 : i32
    %cst_26 = arith.constant 0.000000e+00 : f32
    %54 = vector.broadcast %cst_26 : f32 to vector<16x32xf32>
    %c2_i32 = arith.constant 2 : i32
    %55 = arith.muli %c0_i32, %c2_i32 : i32
    %c0_i32_27 = arith.constant 0 : i32
    %56 = arith.addi %55, %c0_i32_27 : i32
    %57 = arith.index_cast %56 : i32 to index
    %c0_28 = arith.constant 0 : index
    %c0_29 = arith.constant 0 : index
    %58 = vector.load %arg9[%57, %c0_28, %c0_29] : memref<4x32x16xf32, #tpu.memory_space<vmem>>, vector<1x32x16xf32>
    %59 = vector.shape_cast %58 : vector<1x32x16xf32> to vector<32x16xf32>
    %cst_30 = arith.constant dense<0.000000e+00> : vector<16x16xf32>
    %60 = tpu.matmul %47, %59, %cst_30 {dimension_numbers = #tpu.dot_dimension_numbers<[1], [0], [0], [1], [0, 0, 1, 1], [], []>} : vector<16x32xf32>, vector<32x16xf32>, vector<16x16xf32> -> vector<16x16xf32>
    %61 = arith.index_cast %56 : i32 to index
    %c0_31 = arith.constant 0 : index
    %c0_32 = arith.constant 0 : index
    %62 = vector.load %arg10[%61, %c0_31, %c0_32] : memref<4x1x16xf32, #tpu.memory_space<vmem>>, vector<1x1x16xf32>
    %63 = vector.shape_cast %62 : vector<1x1x16xf32> to vector<1x16xf32>
    %64 = vector.broadcast %63 : vector<1x16xf32> to vector<16x16xf32>
    %65 = arith.addf %60, %64 : vector<16x16xf32>
    %66 = arith.index_cast %56 : i32 to index
    %c0_33 = arith.constant 0 : index
    %c0_34 = arith.constant 0 : index
    %67 = vector.load %arg11[%66, %c0_33, %c0_34] : memref<4x32x16xf32, #tpu.memory_space<vmem>>, vector<1x32x16xf32>
    %68 = vector.shape_cast %67 : vector<1x32x16xf32> to vector<32x16xf32>
    %cst_35 = arith.constant dense<0.000000e+00> : vector<16x16xf32>
    %69 = tpu.matmul %47, %68, %cst_35 {dimension_numbers = #tpu.dot_dimension_numbers<[1], [0], [0], [1], [0, 0, 1, 1], [], []>} : vector<16x32xf32>, vector<32x16xf32>, vector<16x16xf32> -> vector<16x16xf32>
    %70 = arith.index_cast %56 : i32 to index
    %c0_36 = arith.constant 0 : index
    %c0_37 = arith.constant 0 : index
    %71 = vector.load %arg12[%70, %c0_36, %c0_37] : memref<4x1x16xf32, #tpu.memory_space<vmem>>, vector<1x1x16xf32>
    %72 = vector.shape_cast %71 : vector<1x1x16xf32> to vector<1x16xf32>
    %73 = vector.broadcast %72 : vector<1x16xf32> to vector<16x16xf32>
    %74 = arith.addf %69, %73 : vector<16x16xf32>
    %75 = arith.index_cast %56 : i32 to index
    %c0_38 = arith.constant 0 : index
    %c0_39 = arith.constant 0 : index
    %76 = vector.load %arg13[%75, %c0_38, %c0_39] : memref<4x32x16xf32, #tpu.memory_space<vmem>>, vector<1x32x16xf32>
    %77 = vector.shape_cast %76 : vector<1x32x16xf32> to vector<32x16xf32>
    %cst_40 = arith.constant dense<0.000000e+00> : vector<16x16xf32>
    %78 = tpu.matmul %47, %77, %cst_40 {dimension_numbers = #tpu.dot_dimension_numbers<[1], [0], [0], [1], [0, 0, 1, 1], [], []>} : vector<16x32xf32>, vector<32x16xf32>, vector<16x16xf32> -> vector<16x16xf32>
    %79 = arith.index_cast %56 : i32 to index
    %c0_41 = arith.constant 0 : index
    %c0_42 = arith.constant 0 : index
    %80 = vector.load %arg14[%79, %c0_41, %c0_42] : memref<4x1x16xf32, #tpu.memory_space<vmem>>, vector<1x1x16xf32>
    %81 = vector.shape_cast %80 : vector<1x1x16xf32> to vector<1x16xf32>
    %82 = vector.broadcast %81 : vector<1x16xf32> to vector<16x16xf32>
    %83 = arith.addf %78, %82 : vector<16x16xf32>
    %84 = vector.shape_cast %65 : vector<16x16xf32> to vector<2x8x16xf32>
    %85 = vector.shape_cast %74 : vector<16x16xf32> to vector<2x8x16xf32>
    %86 = vector.shape_cast %83 : vector<16x16xf32> to vector<2x8x16xf32>
    "tpu.trace_start"() <{level = 10 : i32, message = "bqd,bkd->bqk"}> : () -> ()
    %cst_43 = arith.constant dense<0.000000e+00> : vector<2x8x8xf32>
    %87 = tpu.matmul %84, %85, %cst_43 {dimension_numbers = #tpu.dot_dimension_numbers<[2], [2], [1], [1], [0, 0, 0, 1, 1, 1], [0], [0]>} : vector<2x8x16xf32>, vector<2x8x16xf32>, vector<2x8x8xf32> -> vector<2x8x8xf32>
    "tpu.trace_stop"() : () -> ()
    %88 = vector.broadcast %53 : vector<2x1x8xf32> to vector<2x8x8xf32>
    %89 = arith.addf %87, %88 : vector<2x8x8xf32>
    %cst_44 = arith.constant dense<0xFF800000> : vector<2x8xf32>
    %90 = vector.multi_reduction <maximumf>, %89, %cst_44 [2] : vector<2x8x8xf32> to vector<2x8xf32>
    %91 = vector.shape_cast %90 : vector<2x8xf32> to vector<2x8x1xf32>
    %92 = vector.broadcast %91 : vector<2x8x1xf32> to vector<2x8x8xf32>
    %93 = arith.subf %89, %92 : vector<2x8x8xf32>
    %94 = math.exp %93 : vector<2x8x8xf32>
    %cst_45 = arith.constant dense<0.000000e+00> : vector<2x8xf32>
    %95 = vector.multi_reduction <add>, %94, %cst_45 [2] : vector<2x8x8xf32> to vector<2x8xf32>
    %96 = vector.shape_cast %95 : vector<2x8xf32> to vector<2x8x1xf32>
    %97 = tpu.reciprocal %96 {approx = true} : vector<2x8x1xf32> -> vector<2x8x1xf32>
    %98 = vector.broadcast %97 : vector<2x8x1xf32> to vector<2x8x8xf32>
    %99 = arith.mulf %94, %98 : vector<2x8x8xf32>
    "tpu.trace_start"() <{level = 10 : i32, message = "bqk,bkd->bqd"}> : () -> ()
    %cst_46 = arith.constant dense<0.000000e+00> : vector<2x8x16xf32>
    %100 = tpu.matmul %99, %86, %cst_46 {dimension_numbers = #tpu.dot_dimension_numbers<[2], [1], [1], [2], [0, 0, 0, 1, 1, 2], [0], [0]>} : vector<2x8x8xf32>, vector<2x8x16xf32>, vector<2x8x16xf32> -> vector<2x8x16xf32>
    "tpu.trace_stop"() : () -> ()
    %101 = vector.shape_cast %100 : vector<2x8x16xf32> to vector<16x16xf32>
    %102 = arith.index_cast %56 : i32 to index
    %c0_47 = arith.constant 0 : index
    %c0_48 = arith.constant 0 : index
    %103 = vector.load %arg15[%102, %c0_47, %c0_48] : memref<4x16x32xf32, #tpu.memory_space<vmem>>, vector<1x16x32xf32>
    %104 = vector.shape_cast %103 : vector<1x16x32xf32> to vector<16x32xf32>
    %cst_49 = arith.constant dense<0.000000e+00> : vector<16x32xf32>
    %105 = tpu.matmul %101, %104, %cst_49 {dimension_numbers = #tpu.dot_dimension_numbers<[1], [0], [0], [1], [0, 0, 1, 1], [], []>} : vector<16x16xf32>, vector<16x32xf32>, vector<16x32xf32> -> vector<16x32xf32>
    %106 = arith.addf %54, %105 : vector<16x32xf32>
    %c2_i32_50 = arith.constant 2 : i32
    %107 = arith.muli %c0_i32, %c2_i32_50 : i32
    %c1_i32_51 = arith.constant 1 : i32
    %108 = arith.addi %107, %c1_i32_51 : i32
    %109 = arith.index_cast %108 : i32 to index
    %c0_52 = arith.constant 0 : index
    %c0_53 = arith.constant 0 : index
    %110 = vector.load %arg9[%109, %c0_52, %c0_53] : memref<4x32x16xf32, #tpu.memory_space<vmem>>, vector<1x32x16xf32>
    %111 = vector.shape_cast %110 : vector<1x32x16xf32> to vector<32x16xf32>
    %cst_54 = arith.constant dense<0.000000e+00> : vector<16x16xf32>
    %112 = tpu.matmul %47, %111, %cst_54 {dimension_numbers = #tpu.dot_dimension_numbers<[1], [0], [0], [1], [0, 0, 1, 1], [], []>} : vector<16x32xf32>, vector<32x16xf32>, vector<16x16xf32> -> vector<16x16xf32>
    %113 = arith.index_cast %108 : i32 to index
    %c0_55 = arith.constant 0 : index
    %c0_56 = arith.constant 0 : index
    %114 = vector.load %arg10[%113, %c0_55, %c0_56] : memref<4x1x16xf32, #tpu.memory_space<vmem>>, vector<1x1x16xf32>
    %115 = vector.shape_cast %114 : vector<1x1x16xf32> to vector<1x16xf32>
    %116 = vector.broadcast %115 : vector<1x16xf32> to vector<16x16xf32>
    %117 = arith.addf %112, %116 : vector<16x16xf32>
    %118 = arith.index_cast %108 : i32 to index
    %c0_57 = arith.constant 0 : index
    %c0_58 = arith.constant 0 : index
    %119 = vector.load %arg11[%118, %c0_57, %c0_58] : memref<4x32x16xf32, #tpu.memory_space<vmem>>, vector<1x32x16xf32>
    %120 = vector.shape_cast %119 : vector<1x32x16xf32> to vector<32x16xf32>
    %cst_59 = arith.constant dense<0.000000e+00> : vector<16x16xf32>
    %121 = tpu.matmul %47, %120, %cst_59 {dimension_numbers = #tpu.dot_dimension_numbers<[1], [0], [0], [1], [0, 0, 1, 1], [], []>} : vector<16x32xf32>, vector<32x16xf32>, vector<16x16xf32> -> vector<16x16xf32>
    %122 = arith.index_cast %108 : i32 to index
    %c0_60 = arith.constant 0 : index
    %c0_61 = arith.constant 0 : index
    %123 = vector.load %arg12[%122, %c0_60, %c0_61] : memref<4x1x16xf32, #tpu.memory_space<vmem>>, vector<1x1x16xf32>
    %124 = vector.shape_cast %123 : vector<1x1x16xf32> to vector<1x16xf32>
    %125 = vector.broadcast %124 : vector<1x16xf32> to vector<16x16xf32>
    %126 = arith.addf %121, %125 : vector<16x16xf32>
    %127 = arith.index_cast %108 : i32 to index
    %c0_62 = arith.constant 0 : index
    %c0_63 = arith.constant 0 : index
    %128 = vector.load %arg13[%127, %c0_62, %c0_63] : memref<4x32x16xf32, #tpu.memory_space<vmem>>, vector<1x32x16xf32>
    %129 = vector.shape_cast %128 : vector<1x32x16xf32> to vector<32x16xf32>
    %cst_64 = arith.constant dense<0.000000e+00> : vector<16x16xf32>
    %130 = tpu.matmul %47, %129, %cst_64 {dimension_numbers = #tpu.dot_dimension_numbers<[1], [0], [0], [1], [0, 0, 1, 1], [], []>} : vector<16x32xf32>, vector<32x16xf32>, vector<16x16xf32> -> vector<16x16xf32>
    %131 = arith.index_cast %108 : i32 to index
    %c0_65 = arith.constant 0 : index
    %c0_66 = arith.constant 0 : index
    %132 = vector.load %arg14[%131, %c0_65, %c0_66] : memref<4x1x16xf32, #tpu.memory_space<vmem>>, vector<1x1x16xf32>
    %133 = vector.shape_cast %132 : vector<1x1x16xf32> to vector<1x16xf32>
    %134 = vector.broadcast %133 : vector<1x16xf32> to vector<16x16xf32>
    %135 = arith.addf %130, %134 : vector<16x16xf32>
    %136 = vector.shape_cast %117 : vector<16x16xf32> to vector<2x8x16xf32>
    %137 = vector.shape_cast %126 : vector<16x16xf32> to vector<2x8x16xf32>
    %138 = vector.shape_cast %135 : vector<16x16xf32> to vector<2x8x16xf32>
    "tpu.trace_start"() <{level = 10 : i32, message = "bqd,bkd->bqk"}> : () -> ()
    %cst_67 = arith.constant dense<0.000000e+00> : vector<2x8x8xf32>
    %139 = tpu.matmul %136, %137, %cst_67 {dimension_numbers = #tpu.dot_dimension_numbers<[2], [2], [1], [1], [0, 0, 0, 1, 1, 1], [0], [0]>} : vector<2x8x16xf32>, vector<2x8x16xf32>, vector<2x8x8xf32> -> vector<2x8x8xf32>
    "tpu.trace_stop"() : () -> ()
    %140 = vector.broadcast %53 : vector<2x1x8xf32> to vector<2x8x8xf32>
    %141 = arith.addf %139, %140 : vector<2x8x8xf32>
    %cst_68 = arith.constant dense<0xFF800000> : vector<2x8xf32>
    %142 = vector.multi_reduction <maximumf>, %141, %cst_68 [2] : vector<2x8x8xf32> to vector<2x8xf32>
    %143 = vector.shape_cast %142 : vector<2x8xf32> to vector<2x8x1xf32>
    %144 = vector.broadcast %143 : vector<2x8x1xf32> to vector<2x8x8xf32>
    %145 = arith.subf %141, %144 : vector<2x8x8xf32>
    %146 = math.exp %145 : vector<2x8x8xf32>
    %cst_69 = arith.constant dense<0.000000e+00> : vector<2x8xf32>
    %147 = vector.multi_reduction <add>, %146, %cst_69 [2] : vector<2x8x8xf32> to vector<2x8xf32>
    %148 = vector.shape_cast %147 : vector<2x8xf32> to vector<2x8x1xf32>
    %149 = tpu.reciprocal %148 {approx = true} : vector<2x8x1xf32> -> vector<2x8x1xf32>
    %150 = vector.broadcast %149 : vector<2x8x1xf32> to vector<2x8x8xf32>
    %151 = arith.mulf %146, %150 : vector<2x8x8xf32>
    "tpu.trace_start"() <{level = 10 : i32, message = "bqk,bkd->bqd"}> : () -> ()
    %cst_70 = arith.constant dense<0.000000e+00> : vector<2x8x16xf32>
    %152 = tpu.matmul %151, %138, %cst_70 {dimension_numbers = #tpu.dot_dimension_numbers<[2], [1], [1], [2], [0, 0, 0, 1, 1, 2], [0], [0]>} : vector<2x8x8xf32>, vector<2x8x16xf32>, vector<2x8x16xf32> -> vector<2x8x16xf32>
    "tpu.trace_stop"() : () -> ()
    %153 = vector.shape_cast %152 : vector<2x8x16xf32> to vector<16x16xf32>
    %154 = arith.index_cast %108 : i32 to index
    %c0_71 = arith.constant 0 : index
    %c0_72 = arith.constant 0 : index
    %155 = vector.load %arg15[%154, %c0_71, %c0_72] : memref<4x16x32xf32, #tpu.memory_space<vmem>>, vector<1x16x32xf32>
    %156 = vector.shape_cast %155 : vector<1x16x32xf32> to vector<16x32xf32>
    %cst_73 = arith.constant dense<0.000000e+00> : vector<16x32xf32>
    %157 = tpu.matmul %153, %156, %cst_73 {dimension_numbers = #tpu.dot_dimension_numbers<[1], [0], [0], [1], [0, 0, 1, 1], [], []>} : vector<16x16xf32>, vector<16x32xf32>, vector<16x32xf32> -> vector<16x32xf32>
    %158 = arith.addf %106, %157 : vector<16x32xf32>
    %159 = arith.index_cast %c0_i32 : i32 to index
    %c0_74 = arith.constant 0 : index
    %c0_75 = arith.constant 0 : index
    %160 = vector.load %arg16[%159, %c0_74, %c0_75] : memref<2x1x32xf32, #tpu.memory_space<vmem>>, vector<1x1x32xf32>
    %161 = vector.shape_cast %160 : vector<1x1x32xf32> to vector<1x32xf32>
    %162 = vector.broadcast %161 : vector<1x32xf32> to vector<16x32xf32>
    %163 = arith.addf %158, %162 : vector<16x32xf32>
    %164 = arith.addf %163, %47 : vector<16x32xf32>
    %165 = arith.index_cast %c0_i32 : i32 to index
    %c0_76 = arith.constant 0 : index
    %c0_77 = arith.constant 0 : index
    %166 = vector.load %arg17[%165, %c0_76, %c0_77] : memref<2x1x32xf32, #tpu.memory_space<vmem>>, vector<1x1x32xf32>
    %167 = vector.shape_cast %166 : vector<1x1x32xf32> to vector<1x32xf32>
    %168 = arith.index_cast %c0_i32 : i32 to index
    %c0_78 = arith.constant 0 : index
    %c0_79 = arith.constant 0 : index
    %169 = vector.load %arg18[%168, %c0_78, %c0_79] : memref<2x1x32xf32, #tpu.memory_space<vmem>>, vector<1x1x32xf32>
    %170 = vector.shape_cast %169 : vector<1x1x32xf32> to vector<1x32xf32>
    %cst_80 = arith.constant dense<0.000000e+00> : vector<16xf32>
    %171 = vector.multi_reduction <add>, %164, %cst_80 [1] : vector<16x32xf32> to vector<16xf32>
    %172 = vector.shape_cast %171 : vector<16xf32> to vector<16x1xf32>
    %cst_81 = arith.constant 3.200000e+01 : f32
    %173 = vector.broadcast %cst_81 : f32 to vector<16x1xf32>
    %174 = arith.divf %172, %173 : vector<16x1xf32>
    %175 = vector.broadcast %174 : vector<16x1xf32> to vector<16x32xf32>
    %176 = arith.subf %164, %175 : vector<16x32xf32>
    %177 = arith.mulf %176, %176 : vector<16x32xf32>
    %cst_82 = arith.constant dense<0.000000e+00> : vector<16xf32>
    %178 = vector.multi_reduction <add>, %177, %cst_82 [1] : vector<16x32xf32> to vector<16xf32>
    %179 = vector.shape_cast %178 : vector<16xf32> to vector<16x1xf32>
    %cst_83 = arith.constant 3.200000e+01 : f32
    %180 = vector.broadcast %cst_83 : f32 to vector<16x1xf32>
    %181 = arith.divf %179, %180 : vector<16x1xf32>
    %cst_84 = arith.constant 9.99999996E-13 : f32
    %182 = vector.broadcast %cst_84 : f32 to vector<16x1xf32>
    %183 = arith.addf %181, %182 : vector<16x1xf32>
    %184 = math.rsqrt %183 : vector<16x1xf32>
    %185 = vector.broadcast %184 : vector<16x1xf32> to vector<16x32xf32>
    %186 = arith.mulf %176, %185 : vector<16x32xf32>
    %187 = vector.broadcast %167 : vector<1x32xf32> to vector<16x32xf32>
    %188 = arith.mulf %186, %187 : vector<16x32xf32>
    %189 = vector.broadcast %170 : vector<1x32xf32> to vector<16x32xf32>
    %190 = arith.addf %188, %189 : vector<16x32xf32>
    %191 = arith.index_cast %c0_i32 : i32 to index
    %c0_85 = arith.constant 0 : index
    %c0_86 = arith.constant 0 : index
    %192 = vector.load %arg19[%191, %c0_85, %c0_86] : memref<2x32x64xf32, #tpu.memory_space<vmem>>, vector<1x32x64xf32>
    %193 = vector.shape_cast %192 : vector<1x32x64xf32> to vector<32x64xf32>
    %cst_87 = arith.constant dense<0.000000e+00> : vector<16x64xf32>
    %194 = tpu.matmul %190, %193, %cst_87 {dimension_numbers = #tpu.dot_dimension_numbers<[1], [0], [0], [1], [0, 0, 1, 1], [], []>} : vector<16x32xf32>, vector<32x64xf32>, vector<16x64xf32> -> vector<16x64xf32>
    %195 = arith.index_cast %c0_i32 : i32 to index
    %c0_88 = arith.constant 0 : index
    %c0_89 = arith.constant 0 : index
    %196 = vector.load %arg20[%195, %c0_88, %c0_89] : memref<2x1x64xf32, #tpu.memory_space<vmem>>, vector<1x1x64xf32>
    %197 = vector.shape_cast %196 : vector<1x1x64xf32> to vector<1x64xf32>
    %198 = vector.broadcast %197 : vector<1x64xf32> to vector<16x64xf32>
    %199 = arith.addf %194, %198 : vector<16x64xf32>
    %cst_90 = arith.constant 5.000000e-01 : f32
    %200 = vector.broadcast %cst_90 : f32 to vector<16x64xf32>
    %201 = arith.mulf %200, %199 : vector<16x64xf32>
    %cst_91 = arith.constant 4.471500e-02 : f32
    %202 = vector.broadcast %cst_91 : f32 to vector<16x64xf32>
    %203 = arith.mulf %202, %199 : vector<16x64xf32>
    %204 = arith.mulf %203, %199 : vector<16x64xf32>
    %205 = arith.mulf %204, %199 : vector<16x64xf32>
    %206 = arith.addf %199, %205 : vector<16x64xf32>
    %cst_92 = arith.constant 0.797884583 : f32
    %207 = vector.broadcast %cst_92 : f32 to vector<16x64xf32>
    %208 = arith.mulf %207, %206 : vector<16x64xf32>
    %209 = math.tanh %208 : vector<16x64xf32>
    %cst_93 = arith.constant 1.000000e+00 : f32
    %210 = vector.broadcast %cst_93 : f32 to vector<16x64xf32>
    %211 = arith.addf %210, %209 : vector<16x64xf32>
    %212 = arith.mulf %201, %211 : vector<16x64xf32>
    %213 = arith.index_cast %c0_i32 : i32 to index
    %c0_94 = arith.constant 0 : index
    %c0_95 = arith.constant 0 : index
    %214 = vector.load %arg21[%213, %c0_94, %c0_95] : memref<2x64x32xf32, #tpu.memory_space<vmem>>, vector<1x64x32xf32>
    %215 = vector.shape_cast %214 : vector<1x64x32xf32> to vector<64x32xf32>
    %cst_96 = arith.constant dense<0.000000e+00> : vector<16x32xf32>
    %216 = tpu.matmul %212, %215, %cst_96 {dimension_numbers = #tpu.dot_dimension_numbers<[1], [0], [0], [1], [0, 0, 1, 1], [], []>} : vector<16x64xf32>, vector<64x32xf32>, vector<16x32xf32> -> vector<16x32xf32>
    %217 = arith.index_cast %c0_i32 : i32 to index
    %c0_97 = arith.constant 0 : index
    %c0_98 = arith.constant 0 : index
    %218 = vector.load %arg22[%217, %c0_97, %c0_98] : memref<2x1x32xf32, #tpu.memory_space<vmem>>, vector<1x1x32xf32>
    %219 = vector.shape_cast %218 : vector<1x1x32xf32> to vector<1x32xf32>
    %220 = vector.broadcast %219 : vector<1x32xf32> to vector<16x32xf32>
    %221 = arith.addf %216, %220 : vector<16x32xf32>
    %222 = arith.addf %221, %190 : vector<16x32xf32>
    %223 = arith.index_cast %c0_i32 : i32 to index
    %c0_99 = arith.constant 0 : index
    %c0_100 = arith.constant 0 : index
    %224 = vector.load %arg23[%223, %c0_99, %c0_100] : memref<2x1x32xf32, #tpu.memory_space<vmem>>, vector<1x1x32xf32>
    %225 = vector.shape_cast %224 : vector<1x1x32xf32> to vector<1x32xf32>
    %226 = arith.index_cast %c0_i32 : i32 to index
    %c0_101 = arith.constant 0 : index
    %c0_102 = arith.constant 0 : index
    %227 = vector.load %arg24[%226, %c0_101, %c0_102] : memref<2x1x32xf32, #tpu.memory_space<vmem>>, vector<1x1x32xf32>
    %228 = vector.shape_cast %227 : vector<1x1x32xf32> to vector<1x32xf32>
    %cst_103 = arith.constant dense<0.000000e+00> : vector<16xf32>
    %229 = vector.multi_reduction <add>, %222, %cst_103 [1] : vector<16x32xf32> to vector<16xf32>
    %230 = vector.shape_cast %229 : vector<16xf32> to vector<16x1xf32>
    %cst_104 = arith.constant 3.200000e+01 : f32
    %231 = vector.broadcast %cst_104 : f32 to vector<16x1xf32>
    %232 = arith.divf %230, %231 : vector<16x1xf32>
    %233 = vector.broadcast %232 : vector<16x1xf32> to vector<16x32xf32>
    %234 = arith.subf %222, %233 : vector<16x32xf32>
    %235 = arith.mulf %234, %234 : vector<16x32xf32>
    %cst_105 = arith.constant dense<0.000000e+00> : vector<16xf32>
    %236 = vector.multi_reduction <add>, %235, %cst_105 [1] : vector<16x32xf32> to vector<16xf32>
    %237 = vector.shape_cast %236 : vector<16xf32> to vector<16x1xf32>
    %cst_106 = arith.constant 3.200000e+01 : f32
    %238 = vector.broadcast %cst_106 : f32 to vector<16x1xf32>
    %239 = arith.divf %237, %238 : vector<16x1xf32>
    %cst_107 = arith.constant 9.99999996E-13 : f32
    %240 = vector.broadcast %cst_107 : f32 to vector<16x1xf32>
    %241 = arith.addf %239, %240 : vector<16x1xf32>
    %242 = math.rsqrt %241 : vector<16x1xf32>
    %243 = vector.broadcast %242 : vector<16x1xf32> to vector<16x32xf32>
    %244 = arith.mulf %234, %243 : vector<16x32xf32>
    %245 = vector.broadcast %225 : vector<1x32xf32> to vector<16x32xf32>
    %246 = arith.mulf %244, %245 : vector<16x32xf32>
    %247 = vector.broadcast %228 : vector<1x32xf32> to vector<16x32xf32>
    %248 = arith.addf %246, %247 : vector<16x32xf32>
    %c1_i32_108 = arith.constant 1 : i32
    %249 = vector.extract_strided_slice %248 {offsets = [0, 0], sizes = [1, 32], strides = [1, 1]} : vector<16x32xf32> to vector<1x32xf32>
    %250 = vector.extract_strided_slice %248 {offsets = [8, 0], sizes = [1, 32], strides = [1, 1]} : vector<16x32xf32> to vector<1x32xf32>
    %251 = tpu.concatenate %249, %250 in 0 : vector<1x32xf32>, vector<1x32xf32> -> vector<2x32xf32>
    %cst_109 = arith.constant 0.000000e+00 : f32
    %252 = vector.broadcast %cst_109 : f32 to vector<2x32xf32>
    %c2 = arith.constant 2 : index
    %c0_110 = arith.constant 0 : index
    %c0_111 = arith.constant 0 : index
    %253 = vector.load %arg9[%c2, %c0_110, %c0_111] : memref<4x32x16xf32, #tpu.memory_space<vmem>>, vector<1x32x16xf32>
    %254 = vector.shape_cast %253 : vector<1x32x16xf32> to vector<32x16xf32>
    %cst_112 = arith.constant dense<0.000000e+00> : vector<2x16xf32>
    %255 = tpu.matmul %251, %254, %cst_112 {dimension_numbers = #tpu.dot_dimension_numbers<[1], [0], [0], [1], [0, 0, 1, 1], [], []>} : vector<2x32xf32>, vector<32x16xf32>, vector<2x16xf32> -> vector<2x16xf32>
    %c2_113 = arith.constant 2 : index
    %c0_114 = arith.constant 0 : index
    %c0_115 = arith.constant 0 : index
    %256 = vector.load %arg10[%c2_113, %c0_114, %c0_115] : memref<4x1x16xf32, #tpu.memory_space<vmem>>, vector<1x1x16xf32>
    %257 = vector.shape_cast %256 : vector<1x1x16xf32> to vector<1x16xf32>
    %258 = vector.broadcast %257 : vector<1x16xf32> to vector<2x16xf32>
    %259 = arith.addf %255, %258 : vector<2x16xf32>
    %c2_116 = arith.constant 2 : index
    %c0_117 = arith.constant 0 : index
    %c0_118 = arith.constant 0 : index
    %260 = vector.load %arg11[%c2_116, %c0_117, %c0_118] : memref<4x32x16xf32, #tpu.memory_space<vmem>>, vector<1x32x16xf32>
    %261 = vector.shape_cast %260 : vector<1x32x16xf32> to vector<32x16xf32>
    %cst_119 = arith.constant dense<0.000000e+00> : vector<16x16xf32>
    %262 = tpu.matmul %248, %261, %cst_119 {dimension_numbers = #tpu.dot_dimension_numbers<[1], [0], [0], [1], [0, 0, 1, 1], [], []>} : vector<16x32xf32>, vector<32x16xf32>, vector<16x16xf32> -> vector<16x16xf32>
    %c2_120 = arith.constant 2 : index
    %c0_121 = arith.constant 0 : index
    %c0_122 = arith.constant 0 : index
    %263 = vector.load %arg12[%c2_120, %c0_121, %c0_122] : memref<4x1x16xf32, #tpu.memory_space<vmem>>, vector<1x1x16xf32>
    %264 = vector.shape_cast %263 : vector<1x1x16xf32> to vector<1x16xf32>
    %265 = vector.broadcast %264 : vector<1x16xf32> to vector<16x16xf32>
    %266 = arith.addf %262, %265 : vector<16x16xf32>
    %c2_123 = arith.constant 2 : index
    %c0_124 = arith.constant 0 : index
    %c0_125 = arith.constant 0 : index
    %267 = vector.load %arg13[%c2_123, %c0_124, %c0_125] : memref<4x32x16xf32, #tpu.memory_space<vmem>>, vector<1x32x16xf32>
    %268 = vector.shape_cast %267 : vector<1x32x16xf32> to vector<32x16xf32>
    %cst_126 = arith.constant dense<0.000000e+00> : vector<16x16xf32>
    %269 = tpu.matmul %248, %268, %cst_126 {dimension_numbers = #tpu.dot_dimension_numbers<[1], [0], [0], [1], [0, 0, 1, 1], [], []>} : vector<16x32xf32>, vector<32x16xf32>, vector<16x16xf32> -> vector<16x16xf32>
    %c2_127 = arith.constant 2 : index
    %c0_128 = arith.constant 0 : index
    %c0_129 = arith.constant 0 : index
    %270 = vector.load %arg14[%c2_127, %c0_128, %c0_129] : memref<4x1x16xf32, #tpu.memory_space<vmem>>, vector<1x1x16xf32>
    %271 = vector.shape_cast %270 : vector<1x1x16xf32> to vector<1x16xf32>
    %272 = vector.broadcast %271 : vector<1x16xf32> to vector<16x16xf32>
    %273 = arith.addf %269, %272 : vector<16x16xf32>
    %274 = vector.extract_strided_slice %259 {offsets = [0, 0], sizes = [1, 16], strides = [1, 1]} : vector<2x16xf32> to vector<1x16xf32>
    %275 = vector.extract_strided_slice %266 {offsets = [0, 0], sizes = [8, 16], strides = [1, 1]} : vector<16x16xf32> to vector<8x16xf32>
    %276 = vector.extract_strided_slice %273 {offsets = [0, 0], sizes = [8, 16], strides = [1, 1]} : vector<16x16xf32> to vector<8x16xf32>
    %cst_130 = arith.constant dense<0.000000e+00> : vector<1x8xf32>
    %277 = tpu.matmul %274, %275, %cst_130 {dimension_numbers = #tpu.dot_dimension_numbers<[1], [1], [0], [0], [0, 0, 1, 0], [], []>} : vector<1x16xf32>, vector<8x16xf32>, vector<1x8xf32> -> vector<1x8xf32>
    %278 = vector.extract_strided_slice %53 {offsets = [0, 0, 0], sizes = [1, 1, 8], strides = [1, 1, 1]} : vector<2x1x8xf32> to vector<1x1x8xf32>
    %279 = vector.shape_cast %278 : vector<1x1x8xf32> to vector<1x8xf32>
    %280 = arith.addf %277, %279 : vector<1x8xf32>
    %cst_131 = arith.constant dense<0xFF800000> : vector<1xf32>
    %281 = vector.multi_reduction <maximumf>, %280, %cst_131 [1] : vector<1x8xf32> to vector<1xf32>
    %282 = vector.shape_cast %281 : vector<1xf32> to vector<1x1xf32>
    %283 = vector.broadcast %282 : vector<1x1xf32> to vector<1x8xf32>
    %284 = arith.subf %280, %283 : vector<1x8xf32>
    %285 = math.exp %284 : vector<1x8xf32>
    %cst_132 = arith.constant dense<0.000000e+00> : vector<1xf32>
    %286 = vector.multi_reduction <add>, %285, %cst_132 [1] : vector<1x8xf32> to vector<1xf32>
    %287 = vector.shape_cast %286 : vector<1xf32> to vector<1x1xf32>
    %288 = tpu.reciprocal %287 {approx = true} : vector<1x1xf32> -> vector<1x1xf32>
    %289 = vector.broadcast %288 : vector<1x1xf32> to vector<1x8xf32>
    %290 = arith.mulf %285, %289 : vector<1x8xf32>
    %cst_133 = arith.constant dense<0.000000e+00> : vector<1x16xf32>
    %291 = tpu.matmul %290, %276, %cst_133 {dimension_numbers = #tpu.dot_dimension_numbers<[1], [0], [0], [1], [0, 0, 1, 1], [], []>} : vector<1x8xf32>, vector<8x16xf32>, vector<1x16xf32> -> vector<1x16xf32>
    %292 = vector.extract_strided_slice %259 {offsets = [1, 0], sizes = [1, 16], strides = [1, 1]} : vector<2x16xf32> to vector<1x16xf32>
    %293 = vector.extract_strided_slice %266 {offsets = [8, 0], sizes = [8, 16], strides = [1, 1]} : vector<16x16xf32> to vector<8x16xf32>
    %294 = vector.extract_strided_slice %273 {offsets = [8, 0], sizes = [8, 16], strides = [1, 1]} : vector<16x16xf32> to vector<8x16xf32>
    %cst_134 = arith.constant dense<0.000000e+00> : vector<1x8xf32>
    %295 = tpu.matmul %292, %293, %cst_134 {dimension_numbers = #tpu.dot_dimension_numbers<[1], [1], [0], [0], [0, 0, 1, 0], [], []>} : vector<1x16xf32>, vector<8x16xf32>, vector<1x8xf32> -> vector<1x8xf32>
    %296 = vector.extract_strided_slice %53 {offsets = [1, 0, 0], sizes = [1, 1, 8], strides = [1, 1, 1]} : vector<2x1x8xf32> to vector<1x1x8xf32>
    %297 = vector.shape_cast %296 : vector<1x1x8xf32> to vector<1x8xf32>
    %298 = arith.addf %295, %297 : vector<1x8xf32>
    %cst_135 = arith.constant dense<0xFF800000> : vector<1xf32>
    %299 = vector.multi_reduction <maximumf>, %298, %cst_135 [1] : vector<1x8xf32> to vector<1xf32>
    %300 = vector.shape_cast %299 : vector<1xf32> to vector<1x1xf32>
    %301 = vector.broadcast %300 : vector<1x1xf32> to vector<1x8xf32>
    %302 = arith.subf %298, %301 : vector<1x8xf32>
    %303 = math.exp %302 : vector<1x8xf32>
    %cst_136 = arith.constant dense<0.000000e+00> : vector<1xf32>
    %304 = vector.multi_reduction <add>, %303, %cst_136 [1] : vector<1x8xf32> to vector<1xf32>
    %305 = vector.shape_cast %304 : vector<1xf32> to vector<1x1xf32>
    %306 = tpu.reciprocal %305 {approx = true} : vector<1x1xf32> -> vector<1x1xf32>
    %307 = vector.broadcast %306 : vector<1x1xf32> to vector<1x8xf32>
    %308 = arith.mulf %303, %307 : vector<1x8xf32>
    %cst_137 = arith.constant dense<0.000000e+00> : vector<1x16xf32>
    %309 = tpu.matmul %308, %294, %cst_137 {dimension_numbers = #tpu.dot_dimension_numbers<[1], [0], [0], [1], [0, 0, 1, 1], [], []>} : vector<1x8xf32>, vector<8x16xf32>, vector<1x16xf32> -> vector<1x16xf32>
    %310 = tpu.concatenate %291, %309 in 0 : vector<1x16xf32>, vector<1x16xf32> -> vector<2x16xf32>
    %c2_138 = arith.constant 2 : index
    %c0_139 = arith.constant 0 : index
    %c0_140 = arith.constant 0 : index
    %311 = vector.load %arg15[%c2_138, %c0_139, %c0_140] : memref<4x16x32xf32, #tpu.memory_space<vmem>>, vector<1x16x32xf32>
    %312 = vector.shape_cast %311 : vector<1x16x32xf32> to vector<16x32xf32>
    %cst_141 = arith.constant dense<0.000000e+00> : vector<2x32xf32>
    %313 = tpu.matmul %310, %312, %cst_141 {dimension_numbers = #tpu.dot_dimension_numbers<[1], [0], [0], [1], [0, 0, 1, 1], [], []>} : vector<2x16xf32>, vector<16x32xf32>, vector<2x32xf32> -> vector<2x32xf32>
    %314 = arith.addf %252, %313 : vector<2x32xf32>
    %c3 = arith.constant 3 : index
    %c0_142 = arith.constant 0 : index
    %c0_143 = arith.constant 0 : index
    %315 = vector.load %arg9[%c3, %c0_142, %c0_143] : memref<4x32x16xf32, #tpu.memory_space<vmem>>, vector<1x32x16xf32>
    %316 = vector.shape_cast %315 : vector<1x32x16xf32> to vector<32x16xf32>
    %cst_144 = arith.constant dense<0.000000e+00> : vector<2x16xf32>
    %317 = tpu.matmul %251, %316, %cst_144 {dimension_numbers = #tpu.dot_dimension_numbers<[1], [0], [0], [1], [0, 0, 1, 1], [], []>} : vector<2x32xf32>, vector<32x16xf32>, vector<2x16xf32> -> vector<2x16xf32>
    %c3_145 = arith.constant 3 : index
    %c0_146 = arith.constant 0 : index
    %c0_147 = arith.constant 0 : index
    %318 = vector.load %arg10[%c3_145, %c0_146, %c0_147] : memref<4x1x16xf32, #tpu.memory_space<vmem>>, vector<1x1x16xf32>
    %319 = vector.shape_cast %318 : vector<1x1x16xf32> to vector<1x16xf32>
    %320 = vector.broadcast %319 : vector<1x16xf32> to vector<2x16xf32>
    %321 = arith.addf %317, %320 : vector<2x16xf32>
    %c3_148 = arith.constant 3 : index
    %c0_149 = arith.constant 0 : index
    %c0_150 = arith.constant 0 : index
    %322 = vector.load %arg11[%c3_148, %c0_149, %c0_150] : memref<4x32x16xf32, #tpu.memory_space<vmem>>, vector<1x32x16xf32>
    %323 = vector.shape_cast %322 : vector<1x32x16xf32> to vector<32x16xf32>
    %cst_151 = arith.constant dense<0.000000e+00> : vector<16x16xf32>
    %324 = tpu.matmul %248, %323, %cst_151 {dimension_numbers = #tpu.dot_dimension_numbers<[1], [0], [0], [1], [0, 0, 1, 1], [], []>} : vector<16x32xf32>, vector<32x16xf32>, vector<16x16xf32> -> vector<16x16xf32>
    %c3_152 = arith.constant 3 : index
    %c0_153 = arith.constant 0 : index
    %c0_154 = arith.constant 0 : index
    %325 = vector.load %arg12[%c3_152, %c0_153, %c0_154] : memref<4x1x16xf32, #tpu.memory_space<vmem>>, vector<1x1x16xf32>
    %326 = vector.shape_cast %325 : vector<1x1x16xf32> to vector<1x16xf32>
    %327 = vector.broadcast %326 : vector<1x16xf32> to vector<16x16xf32>
    %328 = arith.addf %324, %327 : vector<16x16xf32>
    %c3_155 = arith.constant 3 : index
    %c0_156 = arith.constant 0 : index
    %c0_157 = arith.constant 0 : index
    %329 = vector.load %arg13[%c3_155, %c0_156, %c0_157] : memref<4x32x16xf32, #tpu.memory_space<vmem>>, vector<1x32x16xf32>
    %330 = vector.shape_cast %329 : vector<1x32x16xf32> to vector<32x16xf32>
    %cst_158 = arith.constant dense<0.000000e+00> : vector<16x16xf32>
    %331 = tpu.matmul %248, %330, %cst_158 {dimension_numbers = #tpu.dot_dimension_numbers<[1], [0], [0], [1], [0, 0, 1, 1], [], []>} : vector<16x32xf32>, vector<32x16xf32>, vector<16x16xf32> -> vector<16x16xf32>
    %c3_159 = arith.constant 3 : index
    %c0_160 = arith.constant 0 : index
    %c0_161 = arith.constant 0 : index
    %332 = vector.load %arg14[%c3_159, %c0_160, %c0_161] : memref<4x1x16xf32, #tpu.memory_space<vmem>>, vector<1x1x16xf32>
    %333 = vector.shape_cast %332 : vector<1x1x16xf32> to vector<1x16xf32>
    %334 = vector.broadcast %333 : vector<1x16xf32> to vector<16x16xf32>
    %335 = arith.addf %331, %334 : vector<16x16xf32>
    %336 = vector.extract_strided_slice %321 {offsets = [0, 0], sizes = [1, 16], strides = [1, 1]} : vector<2x16xf32> to vector<1x16xf32>
    %337 = vector.extract_strided_slice %328 {offsets = [0, 0], sizes = [8, 16], strides = [1, 1]} : vector<16x16xf32> to vector<8x16xf32>
    %338 = vector.extract_strided_slice %335 {offsets = [0, 0], sizes = [8, 16], strides = [1, 1]} : vector<16x16xf32> to vector<8x16xf32>
    %cst_162 = arith.constant dense<0.000000e+00> : vector<1x8xf32>
    %339 = tpu.matmul %336, %337, %cst_162 {dimension_numbers = #tpu.dot_dimension_numbers<[1], [1], [0], [0], [0, 0, 1, 0], [], []>} : vector<1x16xf32>, vector<8x16xf32>, vector<1x8xf32> -> vector<1x8xf32>
    %340 = vector.extract_strided_slice %53 {offsets = [0, 0, 0], sizes = [1, 1, 8], strides = [1, 1, 1]} : vector<2x1x8xf32> to vector<1x1x8xf32>
    %341 = vector.shape_cast %340 : vector<1x1x8xf32> to vector<1x8xf32>
    %342 = arith.addf %339, %341 : vector<1x8xf32>
    %cst_163 = arith.constant dense<0xFF800000> : vector<1xf32>
    %343 = vector.multi_reduction <maximumf>, %342, %cst_163 [1] : vector<1x8xf32> to vector<1xf32>
    %344 = vector.shape_cast %343 : vector<1xf32> to vector<1x1xf32>
    %345 = vector.broadcast %344 : vector<1x1xf32> to vector<1x8xf32>
    %346 = arith.subf %342, %345 : vector<1x8xf32>
    %347 = math.exp %346 : vector<1x8xf32>
    %cst_164 = arith.constant dense<0.000000e+00> : vector<1xf32>
    %348 = vector.multi_reduction <add>, %347, %cst_164 [1] : vector<1x8xf32> to vector<1xf32>
    %349 = vector.shape_cast %348 : vector<1xf32> to vector<1x1xf32>
    %350 = tpu.reciprocal %349 {approx = true} : vector<1x1xf32> -> vector<1x1xf32>
    %351 = vector.broadcast %350 : vector<1x1xf32> to vector<1x8xf32>
    %352 = arith.mulf %347, %351 : vector<1x8xf32>
    %cst_165 = arith.constant dense<0.000000e+00> : vector<1x16xf32>
    %353 = tpu.matmul %352, %338, %cst_165 {dimension_numbers = #tpu.dot_dimension_numbers<[1], [0], [0], [1], [0, 0, 1, 1], [], []>} : vector<1x8xf32>, vector<8x16xf32>, vector<1x16xf32> -> vector<1x16xf32>
    %354 = vector.extract_strided_slice %321 {offsets = [1, 0], sizes = [1, 16], strides = [1, 1]} : vector<2x16xf32> to vector<1x16xf32>
    %355 = vector.extract_strided_slice %328 {offsets = [8, 0], sizes = [8, 16], strides = [1, 1]} : vector<16x16xf32> to vector<8x16xf32>
    %356 = vector.extract_strided_slice %335 {offsets = [8, 0], sizes = [8, 16], strides = [1, 1]} : vector<16x16xf32> to vector<8x16xf32>
    %cst_166 = arith.constant dense<0.000000e+00> : vector<1x8xf32>
    %357 = tpu.matmul %354, %355, %cst_166 {dimension_numbers = #tpu.dot_dimension_numbers<[1], [1], [0], [0], [0, 0, 1, 0], [], []>} : vector<1x16xf32>, vector<8x16xf32>, vector<1x8xf32> -> vector<1x8xf32>
    %358 = vector.extract_strided_slice %53 {offsets = [1, 0, 0], sizes = [1, 1, 8], strides = [1, 1, 1]} : vector<2x1x8xf32> to vector<1x1x8xf32>
    %359 = vector.shape_cast %358 : vector<1x1x8xf32> to vector<1x8xf32>
    %360 = arith.addf %357, %359 : vector<1x8xf32>
    %cst_167 = arith.constant dense<0xFF800000> : vector<1xf32>
    %361 = vector.multi_reduction <maximumf>, %360, %cst_167 [1] : vector<1x8xf32> to vector<1xf32>
    %362 = vector.shape_cast %361 : vector<1xf32> to vector<1x1xf32>
    %363 = vector.broadcast %362 : vector<1x1xf32> to vector<1x8xf32>
    %364 = arith.subf %360, %363 : vector<1x8xf32>
    %365 = math.exp %364 : vector<1x8xf32>
    %cst_168 = arith.constant dense<0.000000e+00> : vector<1xf32>
    %366 = vector.multi_reduction <add>, %365, %cst_168 [1] : vector<1x8xf32> to vector<1xf32>
    %367 = vector.shape_cast %366 : vector<1xf32> to vector<1x1xf32>
    %368 = tpu.reciprocal %367 {approx = true} : vector<1x1xf32> -> vector<1x1xf32>
    %369 = vector.broadcast %368 : vector<1x1xf32> to vector<1x8xf32>
    %370 = arith.mulf %365, %369 : vector<1x8xf32>
    %cst_169 = arith.constant dense<0.000000e+00> : vector<1x16xf32>
    %371 = tpu.matmul %370, %356, %cst_169 {dimension_numbers = #tpu.dot_dimension_numbers<[1], [0], [0], [1], [0, 0, 1, 1], [], []>} : vector<1x8xf32>, vector<8x16xf32>, vector<1x16xf32> -> vector<1x16xf32>
    %372 = tpu.concatenate %353, %371 in 0 : vector<1x16xf32>, vector<1x16xf32> -> vector<2x16xf32>
    %c3_170 = arith.constant 3 : index
    %c0_171 = arith.constant 0 : index
    %c0_172 = arith.constant 0 : index
    %373 = vector.load %arg15[%c3_170, %c0_171, %c0_172] : memref<4x16x32xf32, #tpu.memory_space<vmem>>, vector<1x16x32xf32>
    %374 = vector.shape_cast %373 : vector<1x16x32xf32> to vector<16x32xf32>
    %cst_173 = arith.constant dense<0.000000e+00> : vector<2x32xf32>
    %375 = tpu.matmul %372, %374, %cst_173 {dimension_numbers = #tpu.dot_dimension_numbers<[1], [0], [0], [1], [0, 0, 1, 1], [], []>} : vector<2x16xf32>, vector<16x32xf32>, vector<2x32xf32> -> vector<2x32xf32>
    %376 = arith.addf %314, %375 : vector<2x32xf32>
    %c1 = arith.constant 1 : index
    %c0_174 = arith.constant 0 : index
    %c0_175 = arith.constant 0 : index
    %377 = vector.load %arg16[%c1, %c0_174, %c0_175] : memref<2x1x32xf32, #tpu.memory_space<vmem>>, vector<1x1x32xf32>
    %378 = vector.shape_cast %377 : vector<1x1x32xf32> to vector<1x32xf32>
    %379 = vector.broadcast %378 : vector<1x32xf32> to vector<2x32xf32>
    %380 = arith.addf %376, %379 : vector<2x32xf32>
    %381 = arith.addf %380, %251 : vector<2x32xf32>
    %c1_176 = arith.constant 1 : index
    %c0_177 = arith.constant 0 : index
    %c0_178 = arith.constant 0 : index
    %382 = vector.load %arg17[%c1_176, %c0_177, %c0_178] : memref<2x1x32xf32, #tpu.memory_space<vmem>>, vector<1x1x32xf32>
    %383 = vector.shape_cast %382 : vector<1x1x32xf32> to vector<1x32xf32>
    %c1_179 = arith.constant 1 : index
    %c0_180 = arith.constant 0 : index
    %c0_181 = arith.constant 0 : index
    %384 = vector.load %arg18[%c1_179, %c0_180, %c0_181] : memref<2x1x32xf32, #tpu.memory_space<vmem>>, vector<1x1x32xf32>
    %385 = vector.shape_cast %384 : vector<1x1x32xf32> to vector<1x32xf32>
    %cst_182 = arith.constant dense<0.000000e+00> : vector<2xf32>
    %386 = vector.multi_reduction <add>, %381, %cst_182 [1] : vector<2x32xf32> to vector<2xf32>
    %387 = vector.shape_cast %386 : vector<2xf32> to vector<2x1xf32>
    %cst_183 = arith.constant 3.200000e+01 : f32
    %388 = vector.broadcast %cst_183 : f32 to vector<2x1xf32>
    %389 = arith.divf %387, %388 : vector<2x1xf32>
    %390 = vector.broadcast %389 : vector<2x1xf32> to vector<2x32xf32>
    %391 = arith.subf %381, %390 : vector<2x32xf32>
    %392 = arith.mulf %391, %391 : vector<2x32xf32>
    %cst_184 = arith.constant dense<0.000000e+00> : vector<2xf32>
    %393 = vector.multi_reduction <add>, %392, %cst_184 [1] : vector<2x32xf32> to vector<2xf32>
    %394 = vector.shape_cast %393 : vector<2xf32> to vector<2x1xf32>
    %cst_185 = arith.constant 3.200000e+01 : f32
    %395 = vector.broadcast %cst_185 : f32 to vector<2x1xf32>
    %396 = arith.divf %394, %395 : vector<2x1xf32>
    %cst_186 = arith.constant 9.99999996E-13 : f32
    %397 = vector.broadcast %cst_186 : f32 to vector<2x1xf32>
    %398 = arith.addf %396, %397 : vector<2x1xf32>
    %399 = math.rsqrt %398 : vector<2x1xf32>
    %400 = vector.broadcast %399 : vector<2x1xf32> to vector<2x32xf32>
    %401 = arith.mulf %391, %400 : vector<2x32xf32>
    %402 = vector.broadcast %383 : vector<1x32xf32> to vector<2x32xf32>
    %403 = arith.mulf %401, %402 : vector<2x32xf32>
    %404 = vector.broadcast %385 : vector<1x32xf32> to vector<2x32xf32>
    %405 = arith.addf %403, %404 : vector<2x32xf32>
    %c1_187 = arith.constant 1 : index
    %c0_188 = arith.constant 0 : index
    %c0_189 = arith.constant 0 : index
    %406 = vector.load %arg19[%c1_187, %c0_188, %c0_189] : memref<2x32x64xf32, #tpu.memory_space<vmem>>, vector<1x32x64xf32>
    %407 = vector.shape_cast %406 : vector<1x32x64xf32> to vector<32x64xf32>
    %cst_190 = arith.constant dense<0.000000e+00> : vector<2x64xf32>
    %408 = tpu.matmul %405, %407, %cst_190 {dimension_numbers = #tpu.dot_dimension_numbers<[1], [0], [0], [1], [0, 0, 1, 1], [], []>} : vector<2x32xf32>, vector<32x64xf32>, vector<2x64xf32> -> vector<2x64xf32>
    %c1_191 = arith.constant 1 : index
    %c0_192 = arith.constant 0 : index
    %c0_193 = arith.constant 0 : index
    %409 = vector.load %arg20[%c1_191, %c0_192, %c0_193] : memref<2x1x64xf32, #tpu.memory_space<vmem>>, vector<1x1x64xf32>
    %410 = vector.shape_cast %409 : vector<1x1x64xf32> to vector<1x64xf32>
    %411 = vector.broadcast %410 : vector<1x64xf32> to vector<2x64xf32>
    %412 = arith.addf %408, %411 : vector<2x64xf32>
    %cst_194 = arith.constant 5.000000e-01 : f32
    %413 = vector.broadcast %cst_194 : f32 to vector<2x64xf32>
    %414 = arith.mulf %413, %412 : vector<2x64xf32>
    %cst_195 = arith.constant 4.471500e-02 : f32
    %415 = vector.broadcast %cst_195 : f32 to vector<2x64xf32>
    %416 = arith.mulf %415, %412 : vector<2x64xf32>
    %417 = arith.mulf %416, %412 : vector<2x64xf32>
    %418 = arith.mulf %417, %412 : vector<2x64xf32>
    %419 = arith.addf %412, %418 : vector<2x64xf32>
    %cst_196 = arith.constant 0.797884583 : f32
    %420 = vector.broadcast %cst_196 : f32 to vector<2x64xf32>
    %421 = arith.mulf %420, %419 : vector<2x64xf32>
    %422 = math.tanh %421 : vector<2x64xf32>
    %cst_197 = arith.constant 1.000000e+00 : f32
    %423 = vector.broadcast %cst_197 : f32 to vector<2x64xf32>
    %424 = arith.addf %423, %422 : vector<2x64xf32>
    %425 = arith.mulf %414, %424 : vector<2x64xf32>
    %c1_198 = arith.constant 1 : index
    %c0_199 = arith.constant 0 : index
    %c0_200 = arith.constant 0 : index
    %426 = vector.load %arg21[%c1_198, %c0_199, %c0_200] : memref<2x64x32xf32, #tpu.memory_space<vmem>>, vector<1x64x32xf32>
    %427 = vector.shape_cast %426 : vector<1x64x32xf32> to vector<64x32xf32>
    %cst_201 = arith.constant dense<0.000000e+00> : vector<2x32xf32>
    %428 = tpu.matmul %425, %427, %cst_201 {dimension_numbers = #tpu.dot_dimension_numbers<[1], [0], [0], [1], [0, 0, 1, 1], [], []>} : vector<2x64xf32>, vector<64x32xf32>, vector<2x32xf32> -> vector<2x32xf32>
    %c1_202 = arith.constant 1 : index
    %c0_203 = arith.constant 0 : index
    %c0_204 = arith.constant 0 : index
    %429 = vector.load %arg22[%c1_202, %c0_203, %c0_204] : memref<2x1x32xf32, #tpu.memory_space<vmem>>, vector<1x1x32xf32>
    %430 = vector.shape_cast %429 : vector<1x1x32xf32> to vector<1x32xf32>
    %431 = vector.broadcast %430 : vector<1x32xf32> to vector<2x32xf32>
    %432 = arith.addf %428, %431 : vector<2x32xf32>
    %433 = arith.addf %432, %405 : vector<2x32xf32>
    %c1_205 = arith.constant 1 : index
    %c0_206 = arith.constant 0 : index
    %c0_207 = arith.constant 0 : index
    %434 = vector.load %arg23[%c1_205, %c0_206, %c0_207] : memref<2x1x32xf32, #tpu.memory_space<vmem>>, vector<1x1x32xf32>
    %435 = vector.shape_cast %434 : vector<1x1x32xf32> to vector<1x32xf32>
    %c1_208 = arith.constant 1 : index
    %c0_209 = arith.constant 0 : index
    %c0_210 = arith.constant 0 : index
    %436 = vector.load %arg24[%c1_208, %c0_209, %c0_210] : memref<2x1x32xf32, #tpu.memory_space<vmem>>, vector<1x1x32xf32>
    %437 = vector.shape_cast %436 : vector<1x1x32xf32> to vector<1x32xf32>
    %cst_211 = arith.constant dense<0.000000e+00> : vector<2xf32>
    %438 = vector.multi_reduction <add>, %433, %cst_211 [1] : vector<2x32xf32> to vector<2xf32>
    %439 = vector.shape_cast %438 : vector<2xf32> to vector<2x1xf32>
    %cst_212 = arith.constant 3.200000e+01 : f32
    %440 = vector.broadcast %cst_212 : f32 to vector<2x1xf32>
    %441 = arith.divf %439, %440 : vector<2x1xf32>
    %442 = vector.broadcast %441 : vector<2x1xf32> to vector<2x32xf32>
    %443 = arith.subf %433, %442 : vector<2x32xf32>
    %444 = arith.mulf %443, %443 : vector<2x32xf32>
    %cst_213 = arith.constant dense<0.000000e+00> : vector<2xf32>
    %445 = vector.multi_reduction <add>, %444, %cst_213 [1] : vector<2x32xf32> to vector<2xf32>
    %446 = vector.shape_cast %445 : vector<2xf32> to vector<2x1xf32>
    %cst_214 = arith.constant 3.200000e+01 : f32
    %447 = vector.broadcast %cst_214 : f32 to vector<2x1xf32>
    %448 = arith.divf %446, %447 : vector<2x1xf32>
    %cst_215 = arith.constant 9.99999996E-13 : f32
    %449 = vector.broadcast %cst_215 : f32 to vector<2x1xf32>
    %450 = arith.addf %448, %449 : vector<2x1xf32>
    %451 = math.rsqrt %450 : vector<2x1xf32>
    %452 = vector.broadcast %451 : vector<2x1xf32> to vector<2x32xf32>
    %453 = arith.mulf %443, %452 : vector<2x32xf32>
    %454 = vector.broadcast %435 : vector<1x32xf32> to vector<2x32xf32>
    %455 = arith.mulf %453, %454 : vector<2x32xf32>
    %456 = vector.broadcast %437 : vector<1x32xf32> to vector<2x32xf32>
    %457 = arith.addf %455, %456 : vector<2x32xf32>
    %c0_216 = arith.constant 0 : index
    %c0_217 = arith.constant 0 : index
    %458 = vector.load %arg25[%c0_216, %c0_217] : memref<32x32xf32, #tpu.memory_space<vmem>>, vector<32x32xf32>
    %cst_218 = arith.constant dense<0.000000e+00> : vector<2x32xf32>
    %459 = tpu.matmul %457, %458, %cst_218 {dimension_numbers = #tpu.dot_dimension_numbers<[1], [0], [0], [1], [0, 0, 1, 1], [], []>} : vector<2x32xf32>, vector<32x32xf32>, vector<2x32xf32> -> vector<2x32xf32>
    %c0_219 = arith.constant 0 : index
    %c0_220 = arith.constant 0 : index
    %460 = vector.load %arg26[%c0_219, %c0_220] : memref<1x32xf32, #tpu.memory_space<vmem>>, vector<1x32xf32>
    %461 = vector.broadcast %460 : vector<1x32xf32> to vector<2x32xf32>
    %462 = arith.addf %459, %461 : vector<2x32xf32>
    %463 = math.tanh %462 : vector<2x32xf32>
    %c0_221 = arith.constant 0 : index
    %c0_222 = arith.constant 0 : index
    %464 = vector.load %arg27[%c0_221, %c0_222] : memref<32x128xf32, #tpu.memory_space<vmem>>, vector<32x128xf32>
    %cst_223 = arith.constant dense<0.000000e+00> : vector<2x128xf32>
    %465 = tpu.matmul %463, %464, %cst_223 {dimension_numbers = #tpu.dot_dimension_numbers<[1], [0], [0], [1], [0, 0, 1, 1], [], []>} : vector<2x32xf32>, vector<32x128xf32>, vector<2x128xf32> -> vector<2x128xf32>
    %c0_224 = arith.constant 0 : index
    %c0_225 = arith.constant 0 : index
    %466 = vector.load %arg28[%c0_224, %c0_225] : memref<1x128xf32, #tpu.memory_space<vmem>>, vector<1x128xf32>
    %467 = vector.broadcast %466 : vector<1x128xf32> to vector<2x128xf32>
    %468 = arith.addf %465, %467 : vector<2x128xf32>
    %c0_226 = arith.constant 0 : index
    %c0_227 = arith.constant 0 : index
    %469 = vector.load %arg29[%c0_226, %c0_227] : memref<2x128xf32, #tpu.memory_space<vmem>>, vector<2x128xf32>
    tpu.vector_store %arg29[%c0_226, %c0_227], %468 {strides = array<i32>} : memref<2x128xf32, #tpu.memory_space<vmem>>, vector<2x128xf32>,
    return
  }
}

</mosaic_0001>

<bundles_post_ra>
// kernel: tpu_custom_call.1
= control target key start
LH: loop header
LB: loop body
LE: loop exit
PB: predicated region body
PF: predicated region fallthrough
CT: control target
= control target key end

     0   :  { %s4990_s6 = smov 1   ;;  %s4991_s10 = smov 2   ;;  %s5594_s0 = inlined_call_operand.smem [shape: u32[30], index: -1, kind: input, shape index: {}] }
   0x1   :  { %s5032_s5 = sld [smem:[%s5594_s0]]   ;;  %s4992_s14 = smov 3  }
   0x2   :  { %s5037_s9 = sld [smem:[%s5594_s0 + %s4990_s6]]   ;;  %s4993_s18 = smov 4  }
   0x3   :  { %s5042_s13 = sld [smem:[%s5594_s0 + %s4991_s10]]   ;;  %s4994_s22 = smov 5  }
   0x4   :  { %s5047_s17 = sld [smem:[%s5594_s0 + %s4992_s14]]   ;;  %s4995_s26 = smov 6  }
   0x5   :  { %s5052_s21 = sld [smem:[%s5594_s0 + %s4993_s18]]   ;;  %s4996_s30 = smov 7  }
   0x6   :  { %s5057_s25 = sld [smem:[%s5594_s0 + %s4994_s22]]   ;;  %s4997_s4 = smov 8  }
   0x7   :  { %s5062_s29 = sld [smem:[%s5594_s0 + %s4995_s26]]   ;;  %s4998_s10 = smov 9  }
   0x8   :  { %s5067_s3 = sld [smem:[%s5594_s0 + %s4996_s30]]   ;;  %s4999_s15 = smov 10  }
   0x9   :  { %s5072_s8 = sld [smem:[%s5594_s0 + %s4997_s4]]   ;;  %s5000_s20 = smov 11  }
   0xa   :  { %5607 = sst [smem:[#allocation5_spill]] %s5047_s17  ;;  %s5001_s26 = smov 12  }
   0xb   :  { %s5077_s14 = sld [smem:[%s5594_s0 + %s4998_s10]]   ;;  %s5002_s1 = smov 13  }
   0xc   :  { %s5082_s19 = sld [smem:[%s5594_s0 + %s4999_s15]]   ;;  %s5003_s7 = smov 14  }
   0xd   :  { %s5087_s24 = sld [smem:[%s5594_s0 + %s5000_s20]]   ;;  %s5004_s15 = smov 15  }
   0xe   :  { %s5092_s30 = sld [smem:[%s5594_s0 + %s5001_s26]]   ;;  %s5005_s22 = smov 16  }
   0xf   :  { %s5097_s6 = sld [smem:[%s5594_s0 + %s5002_s1]]   ;;  %s5006_s28 = smov 17  }
  0x10   :  { %s5102_s12 = sld [smem:[%s5594_s0 + %s5003_s7]]   ;;  %s5007_s7 = smov 18  }
  0x11   :  { %s5107_s20 = sld [smem:[%s5594_s0 + %s5004_s15]]   ;;  %s5008_s15 = smov 19  }
  0x12   :  { %s5112_s27 = sld [smem:[%s5594_s0 + %s5005_s22]]   ;;  %s5009_s22 = smov 20  }
  0x13   :  { %s5117_s4 = sld [smem:[%s5594_s0 + %s5006_s28]]   ;;  %s5010_s28 = smov 21  }
  0x14   :  { %s5122_s17 = sld [smem:[%s5594_s0 + %s5007_s7]]   ;;  %s5011_s7 = smov 22  }
  0x17   :  { %5608 = sst [smem:[#allocation6_spill]] %s5107_s20 }
  0x18   :  { %5609 = sst [smem:[#allocation7_spill]] %s5112_s27 }
  0x19   :  { %5610 = sst [smem:[#allocation8_spill]] %s5117_s4 }
  0x1a   :  { %5611 = sst [smem:[#allocation9_spill]] %s5122_s17 }
  0x1b   :  { %s5127_s20 = sld [smem:[%s5594_s0 + %s5008_s15]]   ;;  %s5012_s15 = smov 23  }
  0x1c   :  { %s5132_s27 = sld [smem:[%s5594_s0 + %s5009_s22]]   ;;  %s5013_s22 = smov 24  }
  0x1d   :  { %s5137_s4 = sld [smem:[%s5594_s0 + %s5010_s28]]   ;;  %s5014_s28 = smov 25  }
  0x1e   :  { %s5142_s17 = sld [smem:[%s5594_s0 + %s5011_s7]]   ;;  %s5015_s7 = smov 26  }
  0x21   :  { %5612 = sst [smem:[#allocation10_spill]] %s5127_s20 }
  0x22   :  { %5613 = sst [smem:[#allocation11_spill]] %s5132_s27 }
  0x23   :  { %5614 = sst [smem:[#allocation12_spill]] %s5137_s4 }
  0x24   :  { %5615 = sst [smem:[#allocation13_spill]] %s5142_s17 }
  0x25   :  { %s5147_s20 = sld [smem:[%s5594_s0 + %s5012_s15]]   ;;  %s5016_s15 = smov 27  }
  0x26   :  { %s5152_s27 = sld [smem:[%s5594_s0 + %s5013_s22]]   ;;  %s5017_s22 = smov 28  }
  0x27   :  { %s5157_s4 = sld [smem:[%s5594_s0 + %s5014_s28]]   ;;  %s5018_s28 = smov 29  }
  0x28   :  { %s5162_s17 = sld [smem:[%s5594_s0 + %s5015_s7]]  }
  0x2b   :  { %5616 = sst [smem:[#allocation14_spill]] %s5147_s20 }
  0x2c   :  { %5617 = sst [smem:[#allocation15_spill]] %s5152_s27 }
  0x2d   :  { %5618 = sst [smem:[#allocation16_spill]] %s5157_s4 }
  0x2e   :  { %s5167_s20 = sld [smem:[%s5594_s0 + %s5016_s15]]  }
  0x2f   :  { %s5172_s27 = sld [smem:[%s5594_s0 + %s5017_s22]]  }
  0x30   :  { %s5177_s4 = sld [smem:[%s5594_s0 + %s5018_s28]]  }
  0x31   :  { %v152_v0 = vld [vmem:[%s5037_s9] sm:$0xff]  ;;  %v5019_v1 = vmov 0  }
  0x32   :  { %4908 = vset.pattern.permute.xlu0 %v5019_v1  ;;  %4909 = vset.pattern.permute.xlu1 %v5019_v1  ;;  %v123_v2 = vld [vmem:[%s5032_s5] sm:$0xff] }
  0x33   :  { %156 = vperm.xlu0 %4908, %v152_v0   ;;  %141 = vperm.xlu1 %4909, %v123_v2  }
  0x34   :  { %64 = vsyncpa [#allocation3], 0  ;;  %v153_v3 = vld [vmem:[%s5037_s9 + $0x8] sm:$0xff]  ;;  %v154_v5 = vld [vmem:[%s5057_s25] sm:$0x3]  ;;  %vm174_vm0 = vcmask 1041408   ;;  %v138_v11 = vlaneseq }
  0x35   :  { %v124_v4 = vld [vmem:[%s5032_s5 + $0x8] sm:$0xff]  ;;  %v125_v6 = vld [vmem:[%s5052_s21] sm:$0xff]  ;;  %4309 = vmatprep.subr.msk.mxu0 %vm174_vm0, %v154_v5  ;;  %vm167_vm1 = vcmask 15360   ;;  %v5020_v15 = vmov 0.0   ;;  %v127_v17 = vld [vmem:[%s5052_s21 + $0x10] sm:$0xff]  ;;  %vm253_vm5 = vcmask 818176  }
  0x36   :  { %v126_v7 = vld [vmem:[%s5052_s21 + $0x8] sm:$0xff]  ;;  %v339_v9 = vld [vmem:[%s5042_s13] sm:$0xff]  ;;  %4310 = vmatpush3.msk.msra.mxu0 %vm174_vm0, %v154_v5  ;;  %v5189_v12 = vand.u32 127, %v138_v11  ;;  %v128_v18 = vld [vmem:[%s5052_s21 + $0x18] sm:$0xff]  ;;  %vm260_vm6 = vcmask 1043456   ;;  %vm357_vm9 = vcmask 261120  }
  0x37   :  { %v4676_v8 = vpack.c.bf16 %v126_v7, %v125_v6  ;;  %159 = vperm.xlu0 %4908, %v153_v3   ;;  %144 = vperm.xlu1 %4909, %v124_v4   ;;  %v340_v10 = vld [vmem:[%s5042_s13 + $0x8] sm:$0xff]  ;;  %v4680_v20 = vpack.c.bf16 %v128_v18, %v127_v17  ;;  %v129_v23 = vld [vmem:[%s5052_s21 + $0x20] sm:$0xff]  ;;  %v131_v26 = vld [vmem:[%s5052_s21 + $0x30] sm:$0xff]  ;;  %vm5021_vm11 = vmmov 0   ;;  %vm770_vm12 = vcmask 130048   ;;  %s5619_s0 = sld [smem:[#allocation5_spill]] }
  0x38   :  { %v130_v24 = vld [vmem:[%s5052_s21 + $0x28] sm:$0xff]  ;;  %v132_v27 = vld [vmem:[%s5052_s21 + $0x38] sm:$0xff]  ;;  %v133_v29 = vld [vmem:[%s5052_s21 + $0x40] sm:$0xff]  ;;  %vm923_vm13 = vcmask 64512   ;;  %s5620_s5 = sld [smem:[#allocation6_spill]]  ;;  %s5621_s9 = sld [smem:[#allocation7_spill]] }
  0x39   :  { %4677 = vmatprep.subr.bf16.mxu0 %v4676_v8  ;;  %v4684_v25 = vpack.c.bf16 %v130_v24, %v129_v23  ;;  %v4688_v28 = vpack.c.bf16 %v132_v27, %v131_v26  ;;  %v134_v30 = vld [vmem:[%s5052_s21 + $0x48] sm:$0xff]  ;;  %v135_v32 = vld [vmem:[%s5052_s21 + $0x50] sm:$0xff]  ;;  %v136_v33 = vld [vmem:[%s5052_s21 + $0x58] sm:$0xff]  ;;  %s5622_s13 = sld [smem:[#allocation10_spill]]  ;;  %s5624_s25 = sld [smem:[#allocation9_spill]]  ;;  %vm2023_vm14 = vcmask 523264  }
  0x3a   :  { %v4692_v31 = vpack.c.bf16 %v134_v30, %v133_v29  ;;  %v4696_v34 = vpack.c.bf16 %v136_v33, %v135_v32  ;;  %v137_v35 = vld [vmem:[%s5052_s21 + $0x60] sm:$0xf]  ;;  %v342_v37 = vld [vmem:[%s5062_s29 + $0x8] sm:$0xff]  ;;  %v343_v40 = vld [vmem:[%s5062_s29 + $0x10] sm:$0xff]  ;;  %s5623_s21 = sld [smem:[#allocation8_spill]]  ;;  %s5628_s7 = sld [smem:[#allocation14_spill]] }
  0x3b   :  { %346 = vperm.xlu0 %4908, %v339_v9   ;;  %349 = vperm.xlu1 %4909, %v340_v10   ;;  %v341_v36 = vld [vmem:[%s5062_s29] sm:$0xff]  ;;  %v344_v41 = vld [vmem:[%s5062_s29 + $0x18] sm:$0xff]  ;;  %v495_v63 = vld [vmem:[%s5077_s14 + $0x8] sm:$0xff]  ;;  %s5625_s29 = sld [smem:[#allocation12_spill]]  ;;  %s5629_s10 = sld [smem:[#allocation15_spill]]  ;;  %vm2154_vm15 = vcmask 1040384  }
  0x3c   :  { %v4700_v42 = vpack.c.bf16 %v342_v37, %v341_v36  ;;  %v4704_v43 = vpack.c.bf16 %v344_v41, %v343_v40  ;;  %v494_v62 = vld [vmem:[%s5077_s14] sm:$0xff]  ;;  %v496_v1 = vld [vmem:[%s5077_s14 + $0x10] sm:$0xff]  ;;  %v497_v2 = vld [vmem:[%s5077_s14 + $0x18] sm:$0xff]  ;;  %vm2499_vm0 = vcmask 57344  }
  0x3d   :  { %v4708_v0 = vpack.c.bf16 %v495_v63, %v494_v62  ;;  %v4712_v3 = vpack.c.bf16 %v497_v2, %v496_v1  ;;  %v586_v4 = vld [vmem:[%s5087_s24] sm:$0xff]  ;;  %v587_v5 = vld [vmem:[%s5087_s24 + $0x8] sm:$0xff]  ;;  %v588_v23 = vld [vmem:[%s5087_s24 + $0x10] sm:$0xff] }
  0x3e   :  { %v4716_v6 = vpack.c.bf16 %v587_v5, %v586_v4  ;;  %v3970_v18 = vld [vmem:[%s5072_s8] ss:$0 sm:$0xff]  ;;  %v589_v24 = vld [vmem:[%s5087_s24 + $0x18] sm:$0xff]  ;;  %v673_v29 = vld [vmem:[%s5097_s6 + $0x8] sm:$0xff]  ;;  %s5627_s8 = sld [smem:[#allocation13_spill]] }
  0x3f   :  { %4709 = vmatprep.subr.bf16.mxu1 %v4708_v0  ;;  %v4720_v27 = vpack.c.bf16 %v589_v24, %v588_v23  ;;  %v675_v32 = vld [vmem:[%s5097_s6 + $0x18] sm:$0xff]  ;;  %v3974_v36 = vld [vmem:[%s5092_s30] ss:$0 sm:$0xff] }
  0x40   :  { %4711 = vmatpush3.bf16.msra.mxu1 %v4708_v0 }
  0x41   :  { %4713 = vmatprep.subr.bf16.mxu1 %v4712_v3 }
  0x44   :  { %4715 = vmatpush3.bf16.msra.mxu1 %v4712_v3 }
  0x45   :  { %4717 = vmatprep.subr.bf16.mxu1 %v4716_v6 }
  0xb2   :  { %v157_v13 = vpop.permute.xlu0 %156  ;;  %v142_v14 = vpop.permute.xlu1 %141 }
  0xb3   :  { %vm161_vm2 = vcmp.eq.s32.totalorder %v5189_v12, %v157_v13  ;;  %vm146_vm3 = vcmp.eq.s32.totalorder %v5189_v12, %v142_v14 }
  0xb4   :  { %v3957_v16 = vsel %vm161_vm2, 1.0, %v5020_v15  ;;  %v3955_v21 = vsel %vm146_vm3, 1.0, %v5020_v15 }
  0xb5   :  { %4311 = vmatprep.mubr.msk.f32.mxu0 %vm167_vm1, %v3957_v16  ;;  %v3969_v16 = vld [vmem:[%s5067_s3] ss:$0 sm:$0xff]  ;;  %s5626_s3 = sld [smem:[#allocation11_spill]] }
  0xb6   :  { %v160_v19 = vpop.permute.xlu0 %159  ;;  %v145_v39 = vpop.permute.xlu1 %144 }
  0xb7   :  { %vm162_vm4 = vcmp.eq.s32.totalorder %v5189_v12, %v160_v19  ;;  %vm147_vm7 = vcmp.eq.s32.totalorder %v5189_v12, %v145_v39  ;;  %v3971_v39 = vld [vmem:[%s5082_s19] ss:$0 sm:$0xff] }
  0xb8   :  { %v3958_v22 = vsel %vm162_vm4, 1.0, %v5020_v15  ;;  %v3956_v44 = vsel %vm147_vm7, 1.0, %v5020_v15 }
  0xb9   :  { %4312 = vmatmul.mubr.msk.f32.vlgmr.msra.gmra.mrb[0].mxu0 %vm167_vm1, %v3958_v22  ;;  %vm3497_vm1 = vcmask 254976  }
  0xba   :  { %4679 = vmatpush3.bf16.msra.mxu0 %v4676_v8  ;;  %4340 = vmatprep.mubr.msk.f32.mxu0 %vm253_vm5, %v3955_v21  ;;  %v347_v38 = vpop.permute.xlu0 %346  ;;  %v350_v46 = vpop.permute.xlu1 %349 }
  0xbb   :  { %4681 = vmatprep.subr.bf16.mxu0 %v4680_v20  ;;  %vm351_vm8 = vcmp.eq.s32.totalorder %v5189_v12, %v347_v38  ;;  %vm352_vm10 = vcmp.eq.s32.totalorder %v5189_v12, %v350_v46 }
  0xbc   :  { %v3965_v45 = vsel %vm351_vm8, 1.0, %v5020_v15  ;;  %v3966_v47 = vsel %vm352_vm10, 1.0, %v5020_v15 }
  0xbe   :  { %4683 = vmatpush3.bf16.msra.mxu0 %v4680_v20 }
  0xbf   :  { %4685 = vmatprep.subr.bf16.mxu0 %v4684_v25 }
  0xc2   :  { %4687 = vmatpush3.bf16.msra.mxu0 %v4684_v25 }
  0xc3   :  { %4689 = vmatprep.subr.bf16.mxu0 %v4688_v28 }
  0xc6   :  { %4691 = vmatpush3.bf16.msra.mxu0 %v4688_v28  ;;  %v672_v28 = vld [vmem:[%s5097_s6] sm:$0xff] }
  0xc7   :  { %4693 = vmatprep.subr.bf16.mxu0 %v4692_v31  ;;  %v4724_v30 = vpack.c.bf16 %v673_v29, %v672_v28 }
  0xca   :  { %4695 = vmatpush3.bf16.msra.mxu0 %v4692_v31  ;;  %v674_v31 = vld [vmem:[%s5097_s6 + $0x10] sm:$0xff] }
  0xcb   :  { %4697 = vmatprep.subr.bf16.mxu0 %v4696_v34  ;;  %v4728_v33 = vpack.c.bf16 %v675_v32, %v674_v31  ;;  %v3996_v31 = vld [vmem:[%s5087_s24 + $0x30] sm:$0xff]  ;;  %v3997_v32 = vld [vmem:[%s5087_s24 + $0x38] sm:$0xff] }
  0xce   :  { %4699 = vmatpush3.bf16.msra.mxu0 %v4696_v34 }
  0xcf   :  { %4338 = vmatprep.subr.msk.mxu0 %vm260_vm6, %v137_v35 }
  0xd2   :  { %4339 = vmatpush3.msk.msra.mxu0 %vm260_vm6, %v137_v35 }
  0xd3   :  { %4341 = vmatmul.mubr.msk.f32.vlgmr.msra.gmra.mrb[0].mxu0 %vm253_vm5, %v3956_v44  ;;  %4701 = vmatprep.subr.bf16.mxu0 %v4700_v42 }
  0xd4   :  { %4703 = vmatpush3.bf16.msra.mxu0 %v4700_v42  ;;  %4351 = vmatprep.mubr.msk.f32.mxu0 %vm357_vm9, %v3965_v45 }
  0xd5   :  { %4705 = vmatprep.subr.bf16.mxu0 %v4704_v43 }
  0xd8   :  { %4707 = vmatpush3.bf16.msra.mxu0 %v4704_v43  ;;  %v3977_v43 = vld [vmem:[%s5102_s12] ss:$0 sm:$0xff] }
  0xd9   :  { %4402 = vmatprep.subr.mxu0 %v5020_v15 }
  0xdb   :  { %4352 = vmatmul.mubr.msk.f32.vlgmr.msra.gmra.mrb[0].mxu0 %vm357_vm9, %v3966_v47 }
  0xdc   :  { %4404 = vmatprep.mubr.msk.f32.mxu0 %vm5021_vm11, %v5020_v15 }
 0x1ae   :  { %v4353_v48 = vpop.f32.mrb[0].mxu0 }
 0x1af   :  { %v430_v49 = vpop.f32.mrb[1].mxu0  ;;  %v446_v50 = vsel %vm357_vm9, %v4353_v48, 0.0 }
 0x1b0   :  { %447 = vadd.xlane.f32.xlu1 %v446_v50  ;;  %v443_v51 = vsel %vm357_vm9, %v430_v49, 0.0 }
 0x1b1   :  { %444 = vadd.xlane.f32.xlu0 %v443_v51  ;;  %v487_v51 = vld [vmem:[%s5619_s0 + $0x1] sm:$0x1] }
 0x23d   :  { %v448_v52 = vpop.xlane.xlu1 %447 }
 0x23e   :  { %v451_v53 = vmul.f32 0.03125, %v448_v52  ;;  %v445_v54 = vpop.xlane.xlu0 %444 }
 0x23f   :  { %v450_v55 = vmul.f32 0.03125, %v445_v54  ;;  %v489_v54 = vsub.s32 1, %v487_v51  ;;  %v3991_v51 = vld [vmem:[%s5082_s19 + $0x1] ss:$0 sm:$0xff] }
 0x240   :  { %v453_v56 = vsub.f32 %v4353_v48, %v451_v53  ;;  %v761_v53 = vshrl.u32 %v138_v11, 7 }
 0x241   :  { %v452_v57 = vsub.f32 %v430_v49, %v450_v55  ;;  %v486_v49 = vld [vmem:[%s5619_s0] sm:$0x1] }
 0x242   :  { %v455_v60 = vmul.f32 %v453_v56, %v453_v56  ;;  %v488_v50 = vsub.s32 1, %v486_v49 }
 0x243   :  { %v454_v58 = vmul.f32 %v452_v57, %v452_v57 }
 0x244   :  { %v459_v61 = vsel %vm357_vm9, %v455_v60, 0.0  ;;  %v490_v52 = vcvt.s32.f32 %v488_v50 }
 0x245   :  { %v456_v59 = vsel %vm357_vm9, %v454_v58, 0.0 }
 0x246   :  { %457 = vadd.xlane.f32.xlu0 %v456_v59  ;;  %v5280_v55 = vmul.f32 -1e+09, %v490_v52 }
 0x24a   :  { %460 = vadd.xlane.f32.xlu0 %v459_v61 }
 0x2d3   :  { %v458_v7 = vpop.xlane.xlu0 %457 }
 0x2d4   :  { %v462_v8 = vmul.f32 0.03125, %v458_v7 }
 0x2d6   :  { %v464_v9 = vadd.f32 1e-12, %v462_v8 }
 0x2d7   :  { %v461_v10 = vpop.xlane.xlu0 %460 }
 0x2d8   :  { %4910 = vrsqrt.f32 %v464_v9  ;;  %v463_v12 = vmul.f32 0.03125, %v461_v10 }
 0x2da   :  { %v465_v13 = vadd.f32 1e-12, %v463_v12 }
 0x2dc   :  { %4912 = vrsqrt.f32 %v465_v13 }
 0x2e2   :  { %v4911_v14 = vpop.eup %4910 }
 0x2e3   :  { %v468_v17 = vmul.f32 %v4911_v14, %v452_v57  ;;  %v491_v57 = vcvt.s32.f32 %v489_v54 }
 0x2e5   :  { %v476_v19 = vmul.f32 %v3969_v16, %v468_v17  ;;  %v5285_v59 = vmul.f32 -1e+09, %v491_v57  ;;  %v3987_v17 = vld [vmem:[%s5077_s14 + $0x28] sm:$0xff] }
 0x2e6   :  { %v4913_v20 = vpop.eup %4912 }
 0x2e7   :  { %v5237_v21 = vadd.f32 %v3970_v18, %v476_v19  ;;  %v469_v22 = vmul.f32 %v4913_v20, %v453_v56  ;;  %v762_v56 = vsub.s32 0, %v761_v53  ;;  %v3994_v19 = vld [vmem:[%s5087_s24 + $0x20] sm:$0xff]  ;;  %v3995_v20 = vld [vmem:[%s5087_s24 + $0x28] sm:$0xff] }
 0x2e8   :  { %v4007_v53 = vld [vmem:[%s5102_s12 + $0x1] ss:$0 sm:$0xff] }
 0x2e9   :  { %v477_v25 = vmul.f32 %v3969_v16, %v469_v22  ;;  %4362 = vmatprep.mubr.msk.f32.mxu1 %vm357_vm9, %v5237_v21  ;;  %v5283_v58 = vrot.slane %v5280_v55, %v762_v56  ;;  %v5289_v63 = vrot.slane %v5285_v59, %v762_v56  ;;  %v3986_v16 = vld [vmem:[%s5077_s14 + $0x20] sm:$0xff]  ;;  %v4740_v22 = vpack.c.bf16 %v3995_v20, %v3994_v19 }
 0x2eb   :  { %v5243_v26 = vadd.f32 %v3970_v18, %v477_v25  ;;  %v4732_v18 = vpack.c.bf16 %v3987_v17, %v3986_v16  ;;  %v3988_v25 = vld [vmem:[%s5077_s14 + $0x30] sm:$0xff] }
 0x2ed   :  { %4363 = vmatmul.mubr.msk.f32.vlgmr.msra.gmra.mrb[0].mxu1 %vm357_vm9, %v5243_v26 }
 0x2ee   :  { %4719 = vmatpush3.bf16.msra.mxu1 %v4716_v6  ;;  %4373 = vmatprep.mubr.msk.f32.mxu1 %vm357_vm9, %v5237_v21 }
 0x2ef   :  { %4721 = vmatprep.subr.bf16.mxu1 %v4720_v27 }
 0x2f2   :  { %4723 = vmatpush3.bf16.msra.mxu1 %v4720_v27  ;;  %v3989_v27 = vld [vmem:[%s5077_s14 + $0x38] sm:$0xff] }
 0x2f3   :  { %4725 = vmatprep.subr.bf16.mxu1 %v4724_v30 }
 0x2f5   :  { %4374 = vmatmul.mubr.msk.f32.vlgmr.msra.gmra.mrb[2].mxu1 %vm357_vm9, %v5243_v26 }
 0x2f6   :  { %4727 = vmatpush3.bf16.msra.mxu1 %v4724_v30  ;;  %4384 = vmatprep.mubr.msk.f32.mxu1 %vm357_vm9, %v5237_v21  ;;  %v4736_v30 = vpack.c.bf16 %v3989_v27, %v3988_v25  ;;  %v4016_v25 = vld [vmem:[%s5620_s5 + $0x10] sm:$0xff]  ;;  %v4017_v27 = vld [vmem:[%s5620_s5 + $0x18] sm:$0xff] }
 0x2f7   :  { %4729 = vmatprep.subr.bf16.mxu1 %v4728_v33 }
 0x2fa   :  { %4731 = vmatpush3.bf16.msra.mxu1 %v4728_v33  ;;  %v4002_v33 = vld [vmem:[%s5097_s6 + $0x20] sm:$0xff] }
 0x2fb   :  { %4387 = vmatprep.subr.mxu1 %v5020_v15 }
 0x2fd   :  { %4385 = vmatmul.mubr.msk.f32.vlgmr.msra.gmra.mrb[4].mxu1 %vm357_vm9, %v5243_v26 }
 0x2fe   :  { %4389 = vmatprep.mubr.msk.f32.mxu1 %vm5021_vm11, %v5020_v15 }
 0x3c0   :  { %v4364_v34 = vpop.f32.mrb[0].mxu1 }
 0x3c1   :  { %v577_v35 = vpop.f32.mrb[1].mxu1  ;;  %v583_v45 = vadd.f32 %v4364_v34, %v3971_v39  ;;  %v4003_v34 = vld [vmem:[%s5097_s6 + $0x28] sm:$0xff] }
 0x3c2   :  { %v578_v41 = vadd.f32 %v3971_v39, %v577_v35  ;;  %v4004_v39 = vld [vmem:[%s5097_s6 + $0x30] sm:$0xff] }
 0x3c8   :  { %v4375_v37 = vpop.f32.mrb[2].mxu1 }
 0x3c9   :  { %v663_v38 = vpop.f32.mrb[3].mxu1  ;;  %v669_v42 = vadd.f32 %v4375_v37, %v3974_v36  ;;  %v4744_v37 = vpack.c.bf16 %v3997_v32, %v3996_v31 }
 0x3ca   :  { %v664_v40 = vadd.f32 %v3974_v36, %v663_v38  ;;  %v4748_v38 = vpack.c.bf16 %v4003_v34, %v4002_v33 }
 0x3cc   :  { %4388 = vmatpush3.xpose.msk.msra.mxu1 %vm770_vm12, %v664_v40  ;;  %v4005_v40 = vld [vmem:[%s5097_s6 + $0x38] sm:$0xff] }
 0x3cd   :  { %4392 = vmatprep.subr.mxu1 %v5020_v15 }
 0x3cf   :  { %4390 = vmatmul.mubr.msk.f32.vlgmr.msra.gmra.mrb[6].mxu1 %vm770_vm12, %v578_v41  ;;  %v4752_v41 = vpack.c.bf16 %v4005_v40, %v4004_v39 }
 0x3d0   :  { %v4386_v44 = vpop.f32.mrb[4].mxu1  ;;  %4393 = vmatpush3.xpose.msk.msra.mxu1 %vm770_vm12, %v669_v42  ;;  %4394 = vmatprep.mubr.msk.f32.mxu1 %vm5021_vm11, %v5020_v15 }
 0x3d1   :  { %v755_v46 = vadd.f32 %v4386_v44, %v3977_v43  ;;  %v749_v47 = vpop.f32.mrb[5].mxu1  ;;  %4397 = vmatprep.subr.mxu1 %v5020_v15 }
 0x3d2   :  { %v750_v48 = vadd.f32 %v3977_v43, %v749_v47 }
 0x3d3   :  { %4395 = vmatmul.mubr.msk.f32.vlgmr.msra.gmra.mrb[8].mxu1 %vm770_vm12, %v583_v45  ;;  %4403 = vmatpush3.msra.mxu0 %v755_v46 }
 0x3d4   :  { %4398 = vmatpush3.msra.mxu1 %v750_v48  ;;  %4399 = vmatprep.mubr.msk.f32.mxu1 %vm5021_vm11, %v5020_v15  ;;  %v3999_v48 = vld [vmem:[%s5092_s30 + $0x1] ss:$0 sm:$0xff] }
 0x3d5   :  { %4733 = vmatprep.subr.bf16.mxu1 %v4732_v18  ;;  %4741 = vmatprep.subr.bf16.mxu0 %v4740_v22 }
 0x4a2   :  { %v843_v60 = vpop.f32.mrb[6].mxu1 }
 0x4a3   :  { %v844_v61 = vadd.f32 %v843_v60, %v5283_v58  ;;  %v4391_v62 = vpop.f32.mrb[7].mxu1 }
 0x4a5   :  { %v924_v11 = vsel %vm923_vm13, %v844_v61, -inf }
 0x4a6   :  { %925 = vmax.xlane.f32.xlu0 %v924_v11  ;;  %v919_v0 = vpop.f32.mrb[8].mxu1 }
 0x4a7   :  { %v920_v1 = vadd.f32 %v919_v0, %v5289_v63  ;;  %v4396_v2 = vpop.f32.mrb[9].mxu1 }
 0x4a9   :  { %v927_v3 = vsel %vm923_vm13, %v920_v1, -inf }
 0x4aa   :  { %928 = vmax.xlane.f32.xlu1 %v927_v3 }
 0x533   :  { %v926_v4 = vpop.xlane.xlu0 %925 }
 0x534   :  { %v930_v5 = vsub.f32 %v844_v61, %v926_v4 }
 0x536   :  { %v932_v6 = vmul.f32 1.442695, %v930_v5 }
 0x537   :  { %v929_v7 = vpop.xlane.xlu1 %928 }
 0x538   :  { %4914 = vpow2.f32 %v932_v6  ;;  %v931_v8 = vsub.f32 %v920_v1, %v929_v7 }
 0x53a   :  { %v934_v9 = vmul.f32 1.442695, %v931_v8 }
 0x53c   :  { %4916 = vpow2.f32 %v934_v9 }
 0x542   :  { %v4915_v10 = vpop.eup %4914 }
 0x543   :  { %v936_v12 = vsel %vm923_vm13, %v4915_v10, 0.0 }
 0x544   :  { %937 = vadd.xlane.f32.xlu0 %v936_v12 }
 0x546   :  { %v4917_v13 = vpop.eup %4916 }
 0x547   :  { %v939_v14 = vsel %vm923_vm13, %v4917_v13, 0.0 }
 0x548   :  { %940 = vadd.xlane.f32.xlu1 %v939_v14 }
 0x5d1   :  { %v938_v23 = vpop.xlane.xlu0 %937 }
 0x5d2   :  { %4918 = vrcp.f32 %v938_v23 }
 0x5d5   :  { %v941_v24 = vpop.xlane.xlu1 %940 }
 0x5d6   :  { %4920 = vrcp.f32 %v941_v24 }
 0x5dc   :  { %v4919_v28 = vpop.eup %4918 }
 0x5dd   :  { %v944_v29 = vmul.f32 %v4919_v28, %v4915_v10  ;;  %v4756_v28 = vpack.c.bf16 %v4017_v27, %v4016_v25  ;;  %v2015_v25 = vld [vmem:[%s5625_s29 + $0x38] sm:$0xff] }
 0x5df   :  { %4400 = vmatmul.mubr.msk.f32.vlgmr.msra.gmra.mrb[10].mxu1 %vm923_vm13, %v944_v29  ;;  %v1092_v29 = vld [vmem:[%s5620_s5] sm:$0xff] }
 0x5e0   :  { %v4921_v35 = vpop.eup %4920  ;;  %4735 = vmatpush3.bf16.msra.mxu1 %v4732_v18  ;;  %4415 = vmatprep.mubr.msk.f32.mxu1 %vm357_vm9, %v5237_v21 }
 0x5e1   :  { %v945_v36 = vmul.f32 %v4921_v35, %v4917_v13  ;;  %4737 = vmatprep.subr.bf16.mxu1 %v4736_v30 }
 0x5e3   :  { %4405 = vmatmul.mubr.msk.f32.vlgmr.msra.gmra.mrb[2].mxu0 %vm923_vm13, %v945_v36  ;;  %v4022_v36 = vld [vmem:[%s5621_s9] ss:$0 sm:$0xff] }
 0x5e4   :  { %4739 = vmatpush3.bf16.msra.mxu1 %v4736_v30  ;;  %4743 = vmatpush3.bf16.msra.mxu0 %v4740_v22  ;;  %v1093_v30 = vld [vmem:[%s5620_s5 + $0x8] sm:$0xff] }
 0x5e5   :  { %4426 = vmatprep.mubr.msk.f32.mxu0 %vm357_vm9, %v5237_v21  ;;  %4745 = vmatprep.subr.bf16.mxu0 %v4744_v37  ;;  %v4760_v31 = vpack.c.bf16 %v1093_v30, %v1092_v29 }
 0x5e6   :  { %4749 = vmatprep.subr.bf16.mxu1 %v4748_v38 }
 0x5e7   :  { %4416 = vmatmul.mubr.msk.f32.vlgmr.msra.gmra.mrb[12].mxu1 %vm357_vm9, %v5243_v26 }
 0x5e8   :  { %4747 = vmatpush3.bf16.msra.mxu0 %v4744_v37  ;;  %4751 = vmatpush3.bf16.msra.mxu1 %v4748_v38 }
 0x5e9   :  { %4437 = vmatprep.mubr.msk.f32.mxu1 %vm357_vm9, %v5237_v21  ;;  %4753 = vmatprep.subr.bf16.mxu1 %v4752_v41 }
 0x5ea   :  { %4440 = vmatprep.subr.mxu0 %v5020_v15 }
 0x5eb   :  { %4427 = vmatmul.mubr.msk.f32.vlgmr.msra.gmra.mrb[4].mxu0 %vm357_vm9, %v5243_v26 }
 0x5ec   :  { %4755 = vmatpush3.bf16.msra.mxu1 %v4752_v41  ;;  %4442 = vmatprep.mubr.msk.f32.mxu0 %vm5021_vm11, %v5020_v15 }
 0x5ed   :  { %4450 = vmatprep.subr.mxu1 %v5020_v15 }
 0x5ef   :  { %4438 = vmatmul.mubr.msk.f32.vlgmr.msra.gmra.mrb[14].mxu1 %vm357_vm9, %v5243_v26 }
 0x5f0   :  { %4452 = vmatprep.mubr.msk.f32.mxu1 %vm5021_vm11, %v5020_v15 }
 0x6b2   :  { %v5328_v42 = vpop.f32.mrb[10].mxu1 }
 0x6b3   :  { %v4401_v43 = vpop.f32.mrb[11].mxu1 }
 0x6b6   :  { %v5330_v44 = vpop.f32.mrb[2].mxu0 }
 0x6b7   :  { %v4406_v45 = vpop.f32.mrb[3].mxu0 }
 0x6ba   :  { %v4417_v46 = vpop.f32.mrb[12].mxu1 }
 0x6bb   :  { %v1173_v47 = vpop.f32.mrb[13].mxu1  ;;  %v1179_v62 = vadd.f32 %v4417_v46, %v3991_v51 }
 0x6bc   :  { %v1174_v56 = vadd.f32 %v3991_v51, %v1173_v47 }
 0x6be   :  { %v4428_v49 = vpop.f32.mrb[4].mxu0 }
 0x6bf   :  { %v1261_v50 = vpop.f32.mrb[5].mxu0  ;;  %v1267_v60 = vadd.f32 %v4428_v49, %v3999_v48 }
 0x6c0   :  { %v1262_v52 = vadd.f32 %v3999_v48, %v1261_v50 }
 0x6c2   :  { %v4439_v54 = vpop.f32.mrb[14].mxu1  ;;  %4441 = vmatpush3.xpose.msk.msra.mxu0 %vm770_vm12, %v1262_v52 }
 0x6c3   :  { %v1349_v57 = vpop.f32.mrb[15].mxu1  ;;  %4445 = vmatprep.subr.mxu0 %v5020_v15  ;;  %v1355_v11 = vadd.f32 %v4439_v54, %v4007_v53  ;;  %v1899_v54 = vld [vmem:[%s5622_s13 + $0x8] sm:$0xff] }
 0x6c4   :  { %v1350_v61 = vadd.f32 %v4007_v53, %v1349_v57  ;;  %v1898_v53 = vld [vmem:[%s5622_s13] sm:$0xff]  ;;  %v1900_v57 = vld [vmem:[%s5622_s13 + $0x10] sm:$0xff] }
 0x6c5   :  { %4443 = vmatmul.mubr.msk.f32.vlgmr.msra.gmra.mrb[6].mxu0 %vm770_vm12, %v1174_v56  ;;  %v4764_v56 = vpack.c.bf16 %v1899_v54, %v1898_v53 }
 0x6c6   :  { %4446 = vmatpush3.xpose.msk.msra.mxu0 %vm770_vm12, %v1267_v60  ;;  %4451 = vmatpush3.msra.mxu1 %v1350_v61  ;;  %v1901_v60 = vld [vmem:[%s5622_s13 + $0x18] sm:$0xff] }
 0x6c7   :  { %4447 = vmatprep.mubr.msk.f32.mxu0 %vm5021_vm11, %v5020_v15  ;;  %4455 = vmatprep.subr.mxu0 %v5020_v15  ;;  %v4768_v61 = vpack.c.bf16 %v1901_v60, %v1900_v57 }
 0x6c8   :  { %4757 = vmatprep.subr.bf16.mxu1 %v4756_v28 }
 0x6c9   :  { %4448 = vmatmul.mubr.msk.f32.vlgmr.msra.gmra.mrb[8].mxu0 %vm770_vm12, %v1179_v62 }
 0x6ca   :  { %4456 = vmatpush3.msra.mxu0 %v1355_v11  ;;  %4457 = vmatprep.mubr.msk.f32.mxu0 %vm5021_vm11, %v5020_v15 }
 0x6cb   :  { %4765 = vmatprep.subr.bf16.mxu0 %v4764_v56 }
 0x798   :  { %v1430_v0 = vpop.f32.mrb[6].mxu0 }
 0x799   :  { %v1431_v1 = vadd.f32 %v1430_v0, %v5283_v58  ;;  %v4444_v2 = vpop.f32.mrb[7].mxu0 }
 0x79b   :  { %v1510_v3 = vsel %vm923_vm13, %v1431_v1, -inf }
 0x79c   :  { %1511 = vmax.xlane.f32.xlu1 %v1510_v3  ;;  %v1506_v4 = vpop.f32.mrb[8].mxu0 }
 0x79d   :  { %v1507_v5 = vadd.f32 %v1506_v4, %v5289_v63  ;;  %v4449_v6 = vpop.f32.mrb[9].mxu0 }
 0x79f   :  { %v1513_v7 = vsel %vm923_vm13, %v1507_v5, -inf }
 0x7a0   :  { %1514 = vmax.xlane.f32.xlu0 %v1513_v7 }
 0x829   :  { %v1512_v8 = vpop.xlane.xlu1 %1511 }
 0x82a   :  { %v1516_v9 = vsub.f32 %v1431_v1, %v1512_v8 }
 0x82c   :  { %v1518_v10 = vmul.f32 1.442695, %v1516_v9  ;;  %v4024_v9 = vld [vmem:[%s5624_s25] ss:$0 sm:$0xff] }
 0x82d   :  { %v1515_v12 = vpop.xlane.xlu0 %1514 }
 0x82e   :  { %4922 = vpow2.f32 %v1518_v10  ;;  %v1517_v13 = vsub.f32 %v1507_v5, %v1515_v12  ;;  %v4023_v5 = vld [vmem:[%s5623_s21] ss:$0 sm:$0xff] }
 0x830   :  { %v1520_v14 = vmul.f32 1.442695, %v1517_v13 }
 0x832   :  { %4924 = vpow2.f32 %v1520_v14 }
 0x838   :  { %v4923_v58 = vpop.eup %4922 }
 0x839   :  { %v1522_v16 = vsel %vm923_vm13, %v4923_v58, 0.0 }
 0x83a   :  { %1523 = vadd.xlane.f32.xlu1 %v1522_v16  ;;  %v2009_v16 = vld [vmem:[%s5625_s29 + $0x8] sm:$0xff] }
 0x83c   :  { %v4925_v17 = vpop.eup %4924 }
 0x83d   :  { %v1525_v63 = vsel %vm923_vm13, %v4925_v17, 0.0 }
 0x83e   :  { %1526 = vadd.xlane.f32.xlu0 %v1525_v63  ;;  %v2010_v63 = vld [vmem:[%s5625_s29 + $0x10] sm:$0xff] }
 0x8c7   :  { %v1524_v18 = vpop.xlane.xlu1 %1523 }
 0x8c8   :  { %4926 = vrcp.f32 %v1524_v18  ;;  %v2011_v18 = vld [vmem:[%s5625_s29 + $0x18] sm:$0xff] }
 0x8cb   :  { %v1527_v19 = vpop.xlane.xlu0 %1526 }
 0x8cc   :  { %4928 = vrcp.f32 %v1527_v19  ;;  %v4776_v19 = vpack.c.bf16 %v2011_v18, %v2010_v63  ;;  %v4036_v18 = vld [vmem:[%s5077_s14 + $0x58] sm:$0xff] }
 0x8d2   :  { %v4927_v20 = vpop.eup %4926 }
 0x8d3   :  { %v1530_v22 = vmul.f32 %v4927_v20, %v4923_v58  ;;  %v2008_v58 = vld [vmem:[%s5625_s29] sm:$0xff] }
 0x8d4   :  { %v2012_v20 = vld [vmem:[%s5625_s29 + $0x20] sm:$0xff] }
 0x8d5   :  { %4453 = vmatmul.mubr.msk.f32.vlgmr.msra.gmra.mrb[16].mxu1 %vm923_vm13, %v1530_v22  ;;  %v2013_v22 = vld [vmem:[%s5625_s29 + $0x28] sm:$0xff] }
 0x8d6   :  { %v4929_v23 = vpop.eup %4928  ;;  %4759 = vmatpush3.bf16.msra.mxu1 %v4756_v28  ;;  %v4025_v28 = vld [vmem:[%s5626_s3] ss:$0 sm:$0xff] }
 0x8d7   :  { %v1531_v24 = vmul.f32 %v4929_v23, %v4925_v17  ;;  %4761 = vmatprep.subr.bf16.mxu1 %v4760_v31  ;;  %v4772_v17 = vpack.c.bf16 %v2009_v16, %v2008_v58  ;;  %v4780_v23 = vpack.c.bf16 %v2013_v22, %v2012_v20  ;;  %v4050_v58 = vld [vmem:[%s5097_s6 + $0x50] sm:$0xff]  ;;  %v4051_v16 = vld [vmem:[%s5097_s6 + $0x58] sm:$0xff]  ;;  %v4040_v20 = vld [vmem:[%s5087_s24 + $0x40] sm:$0xff] }
 0x8d8   :  { %v4806_v63 = vpack.c.bf16 %v4051_v16, %v4050_v58  ;;  %v4041_v22 = vld [vmem:[%s5087_s24 + $0x48] sm:$0xff] }
 0x8d9   :  { %4458 = vmatmul.mubr.msk.f32.vlgmr.msra.gmra.mrb[10].mxu0 %vm923_vm13, %v1531_v24  ;;  %v2014_v24 = vld [vmem:[%s5625_s29 + $0x30] sm:$0xff] }
 0x8da   :  { %4767 = vmatpush3.bf16.msra.mxu0 %v4764_v56  ;;  %v4784_v27 = vpack.c.bf16 %v2015_v25, %v2014_v24 }
 0x8db   :  { %4769 = vmatprep.subr.bf16.mxu0 %v4768_v61 }
 0x8de   :  { %4771 = vmatpush3.bf16.msra.mxu0 %v4768_v61 }
 0x9a8   :  { %v1601_v32 = vpop.f32.mrb[16].mxu1 }
 0x9a9   :  { %v4454_v33 = vpop.f32.mrb[17].mxu1  ;;  %4464 = vmatprep.mubr.msk.f32.mxu1 %vm770_vm12, %v1601_v32 }
 0x9ac   :  { %v1674_v34 = vpop.f32.mrb[10].mxu0 }
 0x9ad   :  { %v4459_v35 = vpop.f32.mrb[11].mxu0  ;;  %4465 = vmatmul.mubr.msk.f32.vlgmr.msra.gmra.mrb[18].mxu1 %vm770_vm12, %v1674_v34 }
 0x9ae   :  { %4763 = vmatpush3.bf16.msra.mxu1 %v4760_v31  ;;  %4471 = vmatprep.mubr.msk.f32.mxu1 %vm770_vm12, %v5328_v42 }
 0x9af   :  { %4773 = vmatprep.subr.bf16.mxu1 %v4772_v17 }
 0x9b5   :  { %4472 = vmatmul.mubr.msk.f32.vlgmr.msra.gmra.mrb[18].mxu1 %vm770_vm12, %v5330_v44 }
 0x9b6   :  { %4775 = vmatpush3.bf16.msra.mxu1 %v4772_v17  ;;  %v4035_v17 = vld [vmem:[%s5077_s14 + $0x50] sm:$0xff] }
 0x9b7   :  { %4777 = vmatprep.subr.bf16.mxu1 %v4776_v19 }
 0x9ba   :  { %4779 = vmatpush3.bf16.msra.mxu1 %v4776_v19  ;;  %v4792_v19 = vpack.c.bf16 %v4036_v18, %v4035_v17 }
 0x9bb   :  { %4781 = vmatprep.subr.bf16.mxu1 %v4780_v23 }
 0x9be   :  { %4783 = vmatpush3.bf16.msra.mxu1 %v4780_v23  ;;  %v4794_v23 = vpack.c.bf16 %v4041_v22, %v4040_v20  ;;  %v4084_v22 = vld [vmem:[%s5102_s12 + $0x3] ss:$0 sm:$0xff] }
 0x9bf   :  { %4785 = vmatprep.subr.bf16.mxu1 %v4784_v27 }
 0x9c2   :  { %4787 = vmatpush3.bf16.msra.mxu1 %v4784_v27 }
 0xa88   :  { %v4473_v37 = vpop.f32.mrb[18].mxu1 }
 0xa89   :  { %v1851_v38 = vadd.f32 %v4473_v37, %v4022_v36  ;;  %v1834_v39 = vpop.f32.mrb[19].mxu1 }
 0xa8a   :  { %v1850_v40 = vadd.f32 %v4022_v36, %v1834_v39 }
 0xa8b   :  { %v1853_v41 = vadd.f32 %v1851_v38, %v5243_v26 }
 0xa8c   :  { %v1852_v43 = vadd.f32 %v1850_v40, %v5237_v21 }
 0xa8d   :  { %v1859_v45 = vsel %vm357_vm9, %v1853_v41, 0.0 }
 0xa8e   :  { %1860 = vadd.xlane.f32.xlu0 %v1859_v45  ;;  %v1856_v46 = vsel %vm357_vm9, %v1852_v43, 0.0 }
 0xa8f   :  { %1857 = vadd.xlane.f32.xlu1 %v1856_v46 }
 0xb1b   :  { %v1861_v42 = vpop.xlane.xlu0 %1860 }
 0xb1c   :  { %v1863_v44 = vmul.f32 0.03125, %v1861_v42  ;;  %v1858_v47 = vpop.xlane.xlu1 %1857 }
 0xb1d   :  { %v1862_v48 = vmul.f32 0.03125, %v1858_v47 }
 0xb1e   :  { %v1865_v49 = vsub.f32 %v1853_v41, %v1863_v44 }
 0xb1f   :  { %v1864_v50 = vsub.f32 %v1852_v43, %v1862_v48 }
 0xb20   :  { %v1867_v51 = vmul.f32 %v1865_v49, %v1865_v49 }
 0xb21   :  { %v1866_v26 = vmul.f32 %v1864_v50, %v1864_v50 }
 0xb22   :  { %v1871_v21 = vsel %vm357_vm9, %v1867_v51, 0.0  ;;  %v4028_v51 = vld [vmem:[%s5627_s8] ss:$0 sm:$0xff] }
 0xb23   :  { %1872 = vadd.xlane.f32.xlu0 %v1871_v21  ;;  %v1868_v52 = vsel %vm357_vm9, %v1866_v26, 0.0 }
 0xb24   :  { %1869 = vadd.xlane.f32.xlu1 %v1868_v52 }
 0xbb0   :  { %v1873_v62 = vpop.xlane.xlu0 %1872 }
 0xbb1   :  { %v1875_v11 = vmul.f32 0.03125, %v1873_v62  ;;  %v1870_v0 = vpop.xlane.xlu1 %1869 }
 0xbb2   :  { %v1874_v1 = vmul.f32 0.03125, %v1870_v0 }
 0xbb3   :  { %v1877_v2 = vadd.f32 1e-12, %v1875_v11 }
 0xbb4   :  { %v1876_v3 = vadd.f32 1e-12, %v1874_v1 }
 0xbb5   :  { %4930 = vrsqrt.f32 %v1877_v2 }
 0xbb6   :  { %4932 = vrsqrt.f32 %v1876_v3 }
 0xbbf   :  { %v4931_v4 = vpop.eup %4930 }
 0xbc0   :  { %v4933_v6 = vpop.eup %4932  ;;  %v1881_v7 = vmul.f32 %v4931_v4, %v1865_v49 }
 0xbc1   :  { %v1880_v8 = vmul.f32 %v4933_v6, %v1864_v50 }
 0xbc2   :  { %v1889_v10 = vmul.f32 %v4023_v5, %v1881_v7  ;;  %v4048_v7 = vld [vmem:[%s5097_s6 + $0x40] sm:$0xff] }
 0xbc3   :  { %v1888_v12 = vmul.f32 %v4023_v5, %v1880_v8  ;;  %v4049_v8 = vld [vmem:[%s5097_s6 + $0x48] sm:$0xff] }
 0xbc4   :  { %v1897_v14 = vadd.f32 %v4024_v9, %v1889_v10  ;;  %v4033_v10 = vld [vmem:[%s5077_s14 + $0x40] sm:$0xff] }
 0xbc5   :  { %v1896_v13 = vadd.f32 %v4024_v9, %v1888_v12  ;;  %v4802_v9 = vpack.c.bf16 %v4049_v8, %v4048_v7  ;;  %v4034_v12 = vld [vmem:[%s5077_s14 + $0x48] sm:$0xff]  ;;  %v4081_v7 = vld [vmem:[%s5097_s6 + $0x70] sm:$0xff]  ;;  %v4082_v8 = vld [vmem:[%s5097_s6 + $0x78] sm:$0xff] }
 0xbc7   :  { %4482 = vmatprep.mubr.msk.f32.mxu0 %vm357_vm9, %v1896_v13  ;;  %4803 = vmatprep.subr.bf16.mxu1 %v4802_v9 }
 0xbc8   :  { %4483 = vmatmul.mubr.msk.f32.vlgmr.msra.gmra.mrb[12].mxu0 %vm357_vm9, %v1897_v14 }
 0xbc9   :  { %4512 = vmatprep.mubr.msk.f32.mxu0 %vm5021_vm11, %v5020_v15 }
 0xc9b   :  { %v4484_v29 = vpop.f32.mrb[12].mxu0 }
 0xc9c   :  { %v1987_v30 = vadd.f32 %v4484_v29, %v4025_v28  ;;  %v1981_v31 = vpop.f32.mrb[13].mxu0 }
 0xc9d   :  { %v1982_v32 = vadd.f32 %v4025_v28, %v1981_v31 }
 0xc9e   :  { %v1993_v33 = vmul.f32 0.044715, %v1987_v30  ;;  %v1991_v48 = vmul.f32 0.5, %v1987_v30 }
 0xc9f   :  { %v1992_v34 = vmul.f32 0.044715, %v1982_v32  ;;  %v1990_v44 = vmul.f32 0.5, %v1982_v32 }
 0xca0   :  { %v1995_v35 = vmul.f32 %v1993_v33, %v1987_v30 }
 0xca1   :  { %v1994_v36 = vmul.f32 %v1992_v34, %v1982_v32 }
 0xca2   :  { %v1997_v37 = vmul.f32 %v1995_v35, %v1987_v30 }
 0xca3   :  { %v1996_v38 = vmul.f32 %v1994_v36, %v1982_v32  ;;  %v4032_v36 = vld [vmem:[%s5629_s10] ss:$0 sm:$0xff] }
 0xca4   :  { %v1999_v39 = vadd.f32 %v1997_v37, %v1987_v30 }
 0xca5   :  { %v1998_v40 = vadd.f32 %v1996_v38, %v1982_v32  ;;  %v4031_v32 = vld [vmem:[%s5628_s7] ss:$0 sm:$0xff] }
 0xca6   :  { %v2001_v41 = vmul.f32 0.7978846, %v1999_v39 }
 0xca7   :  { %v2000_v43 = vmul.f32 0.7978846, %v1998_v40  ;;  %v4042_v40 = vld [vmem:[%s5087_s24 + $0x50] sm:$0xff] }
 0xca8   :  { %4934 = vtanh.f32 %v2001_v41  ;;  %v4043_v41 = vld [vmem:[%s5087_s24 + $0x58] sm:$0xff] }
 0xca9   :  { %4936 = vtanh.f32 %v2000_v43 }
 0xcb2   :  { %v4935_v45 = vpop.eup %4934 }
 0xcb3   :  { %v4937_v46 = vpop.eup %4936  ;;  %v2005_v42 = vadd.f32 1.0, %v4935_v45 }
 0xcb4   :  { %v2004_v47 = vadd.f32 1.0, %v4937_v46  ;;  %v4798_v46 = vpack.c.bf16 %v4043_v41, %v4042_v40  ;;  %v4071_v40 = vld [vmem:[%s5087_s24 + $0x60] sm:$0xff]  ;;  %v4072_v41 = vld [vmem:[%s5087_s24 + $0x68] sm:$0xff] }
 0xcb5   :  { %v2007_v50 = vmul.f32 %v2005_v42, %v1991_v48 }
 0xcb6   :  { %v2006_v49 = vmul.f32 %v2004_v47, %v1990_v44  ;;  %v4053_v44 = vld [vmem:[%s5102_s12 + $0x2] ss:$0 sm:$0xff] }
 0xcb8   :  { %4501 = vmatprep.mubr.msk.f32.mxu1 %vm2023_vm14, %v2006_v49 }
 0xcb9   :  { %4502 = vmatmul.mubr.msk.f32.vlgmr.msra.gmra.mrb[20].mxu1 %vm2023_vm14, %v2007_v50 }
 0xcba   :  { %4805 = vmatpush3.bf16.msra.mxu1 %v4802_v9  ;;  %v4828_v9 = vpack.c.bf16 %v4082_v8, %v4081_v7 }
 0xcbb   :  { %4807 = vmatprep.subr.bf16.mxu1 %v4806_v63 }
 0xcbe   :  { %4809 = vmatpush3.bf16.msra.mxu1 %v4806_v63 }
 0xcbf   :  { %4547 = vmatprep.subr.mxu1 %v5020_v15 }
 0xd8c   :  { %v4503_v26 = vpop.f32.mrb[20].mxu1 }
 0xd8d   :  { %v2102_v21 = vadd.f32 %v4503_v26, %v4028_v51  ;;  %v2096_v52 = vpop.f32.mrb[21].mxu1  ;;  %v4038_v26 = vld [vmem:[%s5082_s19 + $0x2] ss:$0 sm:$0xff] }
 0xd8e   :  { %v2097_v53 = vadd.f32 %v4028_v51, %v2096_v52 }
 0xd8f   :  { %v2106_v54 = vadd.f32 %v2102_v21, %v1897_v14  ;;  %v5022_v14 = vmov 0.0|0.0   ;;  %v4045_v21 = vld [vmem:[%s5092_s30 + $0x2] ss:$0 sm:$0xff] }
 0xd90   :  { %v2105_v56 = vadd.f32 %v2097_v53, %v1896_v13  ;;  %v4789_v13 = vpack.c.bf16 %v4034_v12, %v4033_v10  ;;  %4788 = vmatprep.subr.bf16.mxu0 %v5022_v14 }
 0xd91   :  { %v2112_v57 = vsel %vm357_vm9, %v2106_v54, 0.0 }
 0xd92   :  { %2113 = vadd.xlane.f32.xlu1 %v2112_v57  ;;  %v2109_v60 = vsel %vm357_vm9, %v2105_v56, 0.0  ;;  %4790 = vmatpush3.bf16.msra.mxu0 %v4789_v13 }
 0xd93   :  { %2110 = vadd.xlane.f32.xlu0 %v2109_v60  ;;  %4791 = vmatprep.subr.bf16.mxu0 %v5022_v14 }
 0xd96   :  { %4793 = vmatpush3.bf16.msra.mxu0 %v4792_v19 }
 0xd97   :  { %4795 = vmatprep.subr.bf16.mxu0 %v4794_v23 }
 0xe1f   :  { %v2114_v61 = vpop.xlane.xlu1 %2113 }
 0xe20   :  { %v2116_v62 = vmul.f32 0.03125, %v2114_v61  ;;  %v2111_v11 = vpop.xlane.xlu0 %2110 }
 0xe21   :  { %v2115_v0 = vmul.f32 0.03125, %v2111_v11 }
 0xe22   :  { %v2118_v1 = vsub.f32 %v2106_v54, %v2116_v62  ;;  %v4064_v54 = vld [vmem:[%s5077_s14 + $0x60] sm:$0xff] }
 0xe23   :  { %v2117_v2 = vsub.f32 %v2105_v56, %v2115_v0  ;;  %v4065_v56 = vld [vmem:[%s5077_s14 + $0x68] sm:$0xff]  ;;  %v4066_v0 = vld [vmem:[%s5077_s14 + $0x70] sm:$0xff] }
 0xe24   :  { %v2120_v3 = vmul.f32 %v2118_v1, %v2118_v1  ;;  %v4811_v62 = vpack.c.bf16 %v4065_v56, %v4064_v54 }
 0xe25   :  { %v2119_v4 = vmul.f32 %v2117_v2, %v2117_v2 }
 0xe26   :  { %v2124_v5 = vsel %vm357_vm9, %v2120_v3, 0.0  ;;  %v4080_v3 = vld [vmem:[%s5097_s6 + $0x68] sm:$0xff] }
 0xe27   :  { %2125 = vadd.xlane.f32.xlu1 %v2124_v5  ;;  %v2121_v6 = vsel %vm357_vm9, %v2119_v4, 0.0 }
 0xe28   :  { %2122 = vadd.xlane.f32.xlu0 %v2121_v6 }
 0xeb4   :  { %v2126_v24 = vpop.xlane.xlu1 %2125 }
 0xeb5   :  { %v2128_v25 = vmul.f32 0.03125, %v2126_v24  ;;  %v2123_v27 = vpop.xlane.xlu0 %2122 }
 0xeb6   :  { %v2127_v28 = vmul.f32 0.03125, %v2123_v27 }
 0xeb7   :  { %v2130_v29 = vadd.f32 1e-12, %v2128_v25 }
 0xeb8   :  { %v2129_v30 = vadd.f32 1e-12, %v2127_v28 }
 0xeb9   :  { %4938 = vrsqrt.f32 %v2130_v29 }
 0xeba   :  { %4940 = vrsqrt.f32 %v2129_v30 }
 0xec3   :  { %v4939_v31 = vpop.eup %4938 }
 0xec4   :  { %v4941_v33 = vpop.eup %4940  ;;  %v2134_v34 = vmul.f32 %v4939_v31, %v2118_v1  ;;  %v4067_v1 = vld [vmem:[%s5077_s14 + $0x78] sm:$0xff]  ;;  %s5630_s14 = sld [smem:[#allocation16_spill]] }
 0xec5   :  { %v2133_v35 = vmul.f32 %v4941_v33, %v2117_v2  ;;  %v4079_v2 = vld [vmem:[%s5097_s6 + $0x60] sm:$0xff]  ;;  %v4814_v5 = vpack.c.bf16 %v4067_v1, %v4066_v0 }
 0xec6   :  { %v2142_v37 = vmul.f32 %v4031_v32, %v2134_v34  ;;  %v4824_v6 = vpack.c.bf16 %v4080_v3, %v4079_v2 }
 0xec7   :  { %v2141_v38 = vmul.f32 %v4031_v32, %v2133_v35 }
 0xec8   :  { %v5411_v39 = vadd.f32 %v4032_v36, %v2142_v37 }
 0xec9   :  { %v5415_v43 = vadd.f32 %v4032_v36, %v2141_v38 }
 0xeca   :  { %v2152_v45 = vrot.slane %v5411_v39, 7 }
 0xecb   :  { %4534 = vmatprep.mubr.msk.f32.mxu1 %vm357_vm9, %v5415_v43 }
 0xecc   :  { %4535 = vmatmul.mubr.msk.f32.vlgmr.msra.gmra.mrb[22].mxu1 %vm357_vm9, %v5411_v39  ;;  %v5424_v42 = vsel %vm2154_vm15, %v5415_v43, %v2152_v45 }
 0xecd   :  { %4513 = vmatmul.mubr.msk.f32.vlgmr.msra.gmra.mrb[14].mxu0 %vm357_vm9, %v5424_v42  ;;  %4549 = vmatprep.mubr.msk.f32.mxu1 %vm5021_vm11, %v5020_v15 }
 0xece   :  { %4797 = vmatpush3.bf16.msra.mxu0 %v4794_v23  ;;  %4523 = vmatprep.mubr.msk.f32.mxu0 %vm357_vm9, %v5415_v43 }
 0xecf   :  { %4799 = vmatprep.subr.bf16.mxu0 %v4798_v46 }
 0xed2   :  { %4801 = vmatpush3.bf16.msra.mxu0 %v4798_v46 }
 0xed3   :  { %4537 = vmatprep.subr.mxu0 %v5020_v15 }
 0xed5   :  { %4524 = vmatmul.mubr.msk.f32.vlgmr.msra.gmra.mrb[16].mxu0 %vm357_vm9, %v5411_v39 }
 0xed6   :  { %4539 = vmatprep.mubr.msk.f32.mxu0 %vm5021_vm11, %v5020_v15 }
 0xf9f   :  { %v4536_v47 = vpop.f32.mrb[22].mxu1 }
 0xfa0   :  { %v5438_v48 = vadd.f32 %v4536_v47, %v4053_v44  ;;  %v2238_v49 = vpop.f32.mrb[14].mxu0  ;;  %v2414_v50 = vpop.f32.mrb[23].mxu1 }
 0xfa1   :  { %v4514_v51 = vpop.f32.mrb[15].mxu0  ;;  %v2239_v52 = vadd.f32 %v4038_v26, %v2238_v49  ;;  %v2415_v4 = vadd.f32 %v4053_v44, %v2414_v50  ;;  %v4816_v44 = vpack.c.bf16 %v4072_v41, %v4071_v40  ;;  %v4073_v49 = vld [vmem:[%s5087_s24 + $0x70] sm:$0xff]  ;;  %v4074_v50 = vld [vmem:[%s5087_s24 + $0x78] sm:$0xff] }
 0xfa2   :  { %v4820_v26 = vpack.c.bf16 %v4074_v50, %v4073_v49 }
 0xfa3   :  { %v2584_v11 = vrot.slane %v2239_v52, 1 }
 0xfa8   :  { %v4525_v53 = vpop.f32.mrb[16].mxu0 }
 0xfa9   :  { %v2332_v57 = vadd.f32 %v4525_v53, %v4045_v21  ;;  %v2326_v60 = vpop.f32.mrb[17].mxu0 }
 0xfaa   :  { %v2327_v61 = vadd.f32 %v4045_v21, %v2326_v60 }
 0xfab   :  { %4548 = vmatpush3.xpose.msk.msra.mxu1 %vm770_vm12, %v2332_v57  ;;  %v4069_v57 = vld [vmem:[%s5082_s19 + $0x3] ss:$0 sm:$0xff]  ;;  %s5023_s19 = smov [#allocation2]  }
 0xfac   :  { %4538 = vmatpush3.xpose.msk.msra.mxu0 %vm770_vm12, %v2327_v61  ;;  %4810 = vmatprep.subr.bf16.mxu1 %v5022_v14  ;;  %s3918_s24 = sshll.u32 %s5023_s19, 4  ;;  %s3919_s24 = int_to_ptr.vmem [resolvable:$true] %s3918_s24 }
 0xfad   :  { %4542 = vmatprep.subr.mxu0 %v5020_v15  ;;  %p4971_p1 = scmp.lt.s32.totalorder %s3919_s24, %s3919_s24 }
 0xfae   :  { %4550 = vmatmul.mubr.msk.f32.vlgmr.msra.gmra.mrb[24].mxu1 %vm770_vm12, %v2584_v11 }
 0xfaf   :  { %4540 = vmatmul.mubr.msk.f32.vlgmr.msra.gmra.mrb[18].mxu0 %vm770_vm12, %v2239_v52  ;;  %4812 = vmatpush3.bf16.msra.mxu1 %v4811_v62 }
 0xfb0   :  { %4543 = vmatpush3.msra.mxu0 %v2415_v4  ;;  %4813 = vmatprep.subr.bf16.mxu1 %v5022_v14 }
 0xfb1   :  { %4565 = vmatprep.mubr.msk.f32.mxu1 %vm5021_vm11, %v5020_v15  ;;  %4544 = vmatprep.mubr.msk.f32.mxu0 %vm5021_vm11, %v5020_v15 }
 0xfb2   :  { %4552 = vmatprep.subr.mxu0 %v5020_v15 }
 0xfb3   :  { %4815 = vmatpush3.bf16.msra.mxu1 %v4814_v5 }
 0xfb4   :  { %4825 = vmatprep.subr.bf16.mxu1 %v4824_v6 }
 0xfb6   :  { %4566 = vmatmul.mubr.msk.f32.vlgmr.msra.gmra.mrb[26].mxu1 %vm357_vm9, %v5424_v42 }
 0xfb7   :  { %4827 = vmatpush3.bf16.msra.mxu1 %v4824_v6  ;;  %4587 = vmatprep.mubr.msk.f32.mxu1 %vm357_vm9, %v5415_v43 }
 0xfb8   :  { %4829 = vmatprep.subr.bf16.mxu1 %v4828_v9 }
 0xfbb   :  { %4831 = vmatpush3.bf16.msra.mxu1 %v4828_v9 }
 0xfbc   :  { %4600 = vmatprep.subr.mxu1 %v5020_v15 }
 0xfbe   :  { %4588 = vmatmul.mubr.msk.f32.vlgmr.msra.gmra.mrb[28].mxu1 %vm357_vm9, %v5411_v39 }
 0xfbf   :  { %4602 = vmatprep.mubr.msk.f32.mxu1 %vm5021_vm11, %v5020_v15 }
0x1081   :  { %v2656_v10 = vpop.f32.mrb[24].mxu1 }
0x1082   :  { %v2657_v12 = vadd.f32 %v2656_v10, %v5285_v59  ;;  %v2495_v13 = vpop.f32.mrb[18].mxu0  ;;  %v4551_v58 = vpop.f32.mrb[25].mxu1 }
0x1083   :  { %v2496_v16 = vadd.f32 %v2495_v13, %v5280_v55  ;;  %v4541_v17 = vpop.f32.mrb[19].mxu0 }
0x1084   :  { %v2660_v63 = vsel %vm2499_vm0, %v2657_v12, -inf }
0x1085   :  { %2661 = vmax.xlane.f32.xlu0 %v2660_v63  ;;  %v2500_v18 = vsel %vm2499_vm0, %v2496_v16, -inf }
0x1086   :  { %2501 = vmax.xlane.f32.xlu1 %v2500_v18 }
0x1089   :  { %v2830_v19 = vpop.f32.mrb[26].mxu1 }
0x108a   :  { %v4567_v20 = vpop.f32.mrb[27].mxu1  ;;  %v2831_v60 = vadd.f32 %v4069_v57, %v2830_v19 }
0x1091   :  { %v4589_v23 = vpop.f32.mrb[28].mxu1 }
0x1092   :  { %v5476_v24 = vadd.f32 %v4589_v23, %v4084_v22  ;;  %v3001_v25 = vpop.f32.mrb[29].mxu1 }
0x1093   :  { %v3002_v1 = vadd.f32 %v4084_v22, %v3001_v25  ;;  %v4062_v25 = vld [vmem:[%s5620_s5 + $0x20] sm:$0xff] }
0x1112   :  { %v2662_v27 = vpop.xlane.xlu0 %2661 }
0x1113   :  { %v2663_v28 = vsub.f32 %v2657_v12, %v2662_v27  ;;  %v2502_v29 = vpop.xlane.xlu1 %2501  ;;  %v4063_v27 = vld [vmem:[%s5620_s5 + $0x28] sm:$0xff] }
0x1114   :  { %v2503_v30 = vsub.f32 %v2496_v16, %v2502_v29  ;;  %v4836_v29 = vpack.c.bf16 %v4063_v27, %v4062_v25 }
0x1115   :  { %v2664_v31 = vmul.f32 1.442695, %v2663_v28 }
0x1116   :  { %v2504_v32 = vmul.f32 1.442695, %v2503_v30 }
0x1117   :  { %4942 = vpow2.f32 %v2664_v31  ;;  %v4094_v31 = vld [vmem:[%s5620_s5 + $0x38] sm:$0xff] }
0x1118   :  { %4944 = vpow2.f32 %v2504_v32 }
0x1121   :  { %v4943_v33 = vpop.eup %4942 }
0x1122   :  { %v4945_v34 = vpop.eup %4944  ;;  %v2666_v35 = vsel %vm2499_vm0, %v4943_v33, 0.0 }
0x1123   :  { %2667 = vadd.xlane.f32.xlu0 %v2666_v35  ;;  %v2506_v36 = vsel %vm2499_vm0, %v4945_v34, 0.0 }
0x1124   :  { %2507 = vadd.xlane.f32.xlu1 %v2506_v36 }
0x11b0   :  { %v2668_v37 = vpop.xlane.xlu0 %2667 }
0x11b1   :  { %v2508_v38 = vpop.xlane.xlu1 %2507 }
0x11b2   :  { %4946 = vrcp.f32 %v2508_v38 }
0x11b3   :  { %4948 = vrcp.f32 %v2668_v37 }
0x11bc   :  { %v4947_v45 = vpop.eup %4946 }
0x11bd   :  { %v2510_v46 = vmul.f32 %v4947_v45, %v4945_v34  ;;  %v4949_v47 = vpop.eup %4948 }
0x11be   :  { %v2670_v51 = vmul.f32 %v4949_v47, %v4943_v33 }
0x11bf   :  { %4545 = vmatmul.mubr.msk.f32.vlgmr.msra.gmra.mrb[20].mxu0 %vm923_vm13, %v2510_v46  ;;  %v4098_v46 = vld [vmem:[%s5621_s9 + $0x1] ss:$0 sm:$0xff] }
0x11c0   :  { %4553 = vmatpush3.msra.mxu0 %v5438_v48  ;;  %4554 = vmatprep.mubr.msk.f32.mxu0 %vm5021_vm11, %v5020_v15 }
0x11c1   :  { %4817 = vmatprep.subr.bf16.mxu0 %v4816_v44 }
0x11c3   :  { %4555 = vmatmul.mubr.msk.f32.vlgmr.msra.gmra.mrb[22].mxu0 %vm923_vm13, %v2670_v51 }
0x11c4   :  { %4819 = vmatpush3.bf16.msra.mxu0 %v4816_v44  ;;  %4576 = vmatprep.mubr.msk.f32.mxu0 %vm357_vm9, %v5415_v43  ;;  %v4076_v43 = vld [vmem:[%s5092_s30 + $0x3] ss:$0 sm:$0xff]  ;;  %s4966_s30 = scalar_lea.vmem %s3919_s24, 32 }
0x11c5   :  { %4821 = vmatprep.subr.bf16.mxu0 %v4820_v26  ;;  %p4967_p0 = scmp.ne.s32.totalorder %s3919_s24, %s4966_s30  ;;  %p4972_p2 = scmp.lt.s32.totalorder %s4966_s30, %s4966_s30 }
0x11c7   :  { %p4973_p3 = por %p4972_p2, %p4971_p1 }
0x11c8   :  { %4823 = vmatpush3.bf16.msra.mxu0 %v4820_v26 }
0x11c9   :  { %4590 = vmatprep.subr.mxu0 %v5020_v15  ;;  %p4974_p4 = pnand %p4973_p3, %p4967_p0 }
0x11cb   :  { %4577 = vmatmul.mubr.msk.f32.vlgmr.msra.gmra.mrb[24].mxu0 %vm357_vm9, %v5411_v39  ;;  %v3170_v39 = vrot.slane %v2831_v60, 1 }
0x11cc   :  { %4592 = vmatprep.mubr.msk.f32.mxu0 %vm5021_vm11, %v5020_v15 }
0x1292   :  { %v2580_v48 = vpop.f32.mrb[20].mxu0 }
0x1293   :  { %v4546_v21 = vpop.f32.mrb[21].mxu0 }
0x1296   :  { %v2740_v52 = vpop.f32.mrb[22].mxu0 }
0x1297   :  { %v2745_v53 = vrot.slane %v2740_v52, 7  ;;  %v4556_v54 = vpop.f32.mrb[23].mxu0 }
0x1298   :  { %v4103_v54 = vld [vmem:[%s5622_s13 + $0x20] sm:$0xff] }
0x1299   :  { %v5497_v56 = vsel %vm2154_vm15, %v2580_v48, %v2745_v53 }
0x129e   :  { %v4578_v61 = vpop.f32.mrb[24].mxu0 }
0x129f   :  { %v2919_v62 = vadd.f32 %v4578_v61, %v4076_v43  ;;  %v2913_v11 = vpop.f32.mrb[25].mxu0 }
0x12a0   :  { %v2914_v0 = vadd.f32 %v4076_v43, %v2913_v11  ;;  %v4105_v43 = vld [vmem:[%s5622_s13 + $0x30] sm:$0xff] }
0x12a1   :  { %4601 = vmatpush3.xpose.msk.msra.mxu1 %vm770_vm12, %v2919_v62 }
0x12a2   :  { %4591 = vmatpush3.xpose.msk.msra.mxu0 %vm770_vm12, %v2914_v0  ;;  %4832 = vmatprep.subr.bf16.mxu1 %v5022_v14 }
0x12a3   :  { %4595 = vmatprep.subr.mxu0 %v5020_v15 }
0x12a4   :  { %4603 = vmatmul.mubr.msk.f32.vlgmr.msra.gmra.mrb[30].mxu1 %vm770_vm12, %v3170_v39  ;;  %v4101_v39 = vld [vmem:[%s5623_s21 + $0x1] ss:$0 sm:$0xff] }
0x12a5   :  { %4593 = vmatmul.mubr.msk.f32.vlgmr.msra.gmra.mrb[26].mxu0 %vm770_vm12, %v2831_v60  ;;  %4614 = vmatprep.mubr.msk.f32.mxu1 %vm5021_vm11, %v5020_v15  ;;  %v4106_v60 = vld [vmem:[%s5622_s13 + $0x38] sm:$0xff] }
0x12a6   :  { %4596 = vmatpush3.msra.mxu0 %v3002_v1  ;;  %4597 = vmatprep.mubr.msk.f32.mxu0 %vm5021_vm11, %v5020_v15 }
0x12a7   :  { %4605 = vmatprep.subr.mxu0 %v5020_v15 }
0x1377   :  { %v3242_v2 = vpop.f32.mrb[30].mxu1 }
0x1378   :  { %v3243_v3 = vadd.f32 %v3242_v2, %v5285_v59  ;;  %v3082_v4 = vpop.f32.mrb[26].mxu0  ;;  %v4604_v5 = vpop.f32.mrb[31].mxu1  ;;  %v4102_v2 = vld [vmem:[%s5624_s25 + $0x1] ss:$0 sm:$0xff] }
0x1379   :  { %v3083_v6 = vadd.f32 %v3082_v4, %v5280_v55  ;;  %v4594_v7 = vpop.f32.mrb[27].mxu0  ;;  %v4110_v5 = vld [vmem:[%s5625_s29 + $0x40] sm:$0xff] }
0x137a   :  { %v3246_v8 = vsel %vm2499_vm0, %v3243_v3, -inf }
0x137b   :  { %3247 = vmax.xlane.f32.xlu0 %v3246_v8  ;;  %v3086_v9 = vsel %vm2499_vm0, %v3083_v6, -inf  ;;  %v4112_v8 = vld [vmem:[%s5625_s29 + $0x50] sm:$0xff] }
0x137c   :  { %3087 = vmax.xlane.f32.xlu1 %v3086_v9  ;;  %v4113_v9 = vld [vmem:[%s5625_s29 + $0x58] sm:$0xff] }
0x1408   :  { %v3248_v10 = vpop.xlane.xlu0 %3247 }
0x1409   :  { %v3249_v12 = vsub.f32 %v3243_v3, %v3248_v10  ;;  %v3088_v13 = vpop.xlane.xlu1 %3087  ;;  %v4848_v10 = vpack.c.bf16 %v4113_v9, %v4112_v8 }
0x140a   :  { %v3089_v58 = vsub.f32 %v3083_v6, %v3088_v13  ;;  %v4111_v6 = vld [vmem:[%s5625_s29 + $0x48] sm:$0xff] }
0x140b   :  { %v3250_v16 = vmul.f32 1.442695, %v3249_v12  ;;  %v4845_v7 = vpack.c.bf16 %v4111_v6, %v4110_v5  ;;  %v4114_v12 = vld [vmem:[%s5625_s29 + $0x60] sm:$0xff]  ;;  %v4115_v13 = vld [vmem:[%s5625_s29 + $0x68] sm:$0xff] }
0x140c   :  { %v3090_v17 = vmul.f32 1.442695, %v3089_v58  ;;  %v4851_v58 = vpack.c.bf16 %v4115_v13, %v4114_v12 }
0x140d   :  { %4950 = vpow2.f32 %v3250_v16  ;;  %v4116_v16 = vld [vmem:[%s5625_s29 + $0x70] sm:$0xff] }
0x140e   :  { %4952 = vpow2.f32 %v3090_v17  ;;  %v4117_v17 = vld [vmem:[%s5625_s29 + $0x78] sm:$0xff] }
0x1417   :  { %v4951_v59 = vpop.eup %4950 }
0x1418   :  { %v4953_v63 = vpop.eup %4952  ;;  %v3252_v55 = vsel %vm2499_vm0, %v4951_v59, 0.0 }
0x1419   :  { %3253 = vadd.xlane.f32.xlu0 %v3252_v55  ;;  %v3092_v18 = vsel %vm2499_vm0, %v4953_v63, 0.0 }
0x141a   :  { %3093 = vadd.xlane.f32.xlu1 %v3092_v18 }
0x14a6   :  { %v3254_v19 = vpop.xlane.xlu0 %3253 }
0x14a7   :  { %v3094_v20 = vpop.xlane.xlu1 %3093 }
0x14a8   :  { %4954 = vrcp.f32 %v3094_v20 }
0x14a9   :  { %4956 = vrcp.f32 %v3254_v19 }
0x14b2   :  { %v4955_v22 = vpop.eup %4954 }
0x14b3   :  { %v3096_v23 = vmul.f32 %v4955_v22, %v4953_v63  ;;  %v4957_v28 = vpop.eup %4956  ;;  %v4108_v63 = vld [vmem:[%s5626_s3 + $0x1] ss:$0 sm:$0xff] }
0x14b4   :  { %v3256_v30 = vmul.f32 %v4957_v28, %v4951_v59  ;;  %v4854_v59 = vpack.c.bf16 %v4117_v17, %v4116_v16 }
0x14b5   :  { %4598 = vmatmul.mubr.msk.f32.vlgmr.msra.gmra.mrb[28].mxu0 %vm923_vm13, %v3096_v23 }
0x14b6   :  { %4606 = vmatpush3.msra.mxu0 %v5476_v24  ;;  %4607 = vmatprep.mubr.msk.f32.mxu0 %vm5021_vm11, %v5020_v15  ;;  %v4093_v24 = vld [vmem:[%s5620_s5 + $0x30] sm:$0xff] }
0x14b7   :  { %4835 = vmatprep.subr.bf16.mxu0 %v5022_v14  ;;  %v4833_v32 = vpack.c.bf16 %v4094_v31, %v4093_v24  ;;  %v4119_v31 = vld [vmem:[%s5627_s8 + $0x1] ss:$0 sm:$0xff] }
0x14b9   :  { %4608 = vmatmul.mubr.msk.f32.vlgmr.msra.gmra.mrb[30].mxu0 %vm923_vm13, %v3256_v30  ;;  %4834 = vmatpush3.bf16.msra.mxu1 %v4833_v32 }
0x14ba   :  { %4837 = vmatpush3.bf16.msra.mxu0 %v4836_v29  ;;  %4621 = vmatprep.mubr.msk.f32.mxu0 %vm5021_vm11, %v5020_v15 }
0x14bb   :  { %4844 = vmatprep.subr.bf16.mxu0 %v5022_v14  ;;  %4838 = vmatprep.subr.bf16.mxu1 %v5022_v14 }
0x14bd   :  { %4622 = vmatmul.mubr.msk.f32.vlgmr.msra.gmra.mrb[32].mxu0 %vm770_vm12, %v5497_v56  ;;  %v4104_v56 = vld [vmem:[%s5622_s13 + $0x28] sm:$0xff] }
0x14be   :  { %4651 = vmatprep.mubr.msk.f32.mxu0 %vm5021_vm11, %v5020_v15  ;;  %v4839_v57 = vpack.c.bf16 %v4104_v56, %v4103_v54  ;;  %4846 = vmatpush3.bf16.msra.mxu0 %v4845_v7  ;;  %v4124_v56 = vld [vmem:[%s5629_s10 + $0x1] ss:$0 sm:$0xff] }
0x14bf   :  { %4847 = vmatprep.subr.bf16.mxu0 %v5022_v14 }
0x14c2   :  { %4849 = vmatpush3.bf16.msra.mxu0 %v4848_v10 }
0x14c3   :  { %4850 = vmatprep.subr.bf16.mxu0 %v5022_v14 }
0x14c6   :  { %4852 = vmatpush3.bf16.msra.mxu0 %v4851_v58 }
0x14c7   :  { %4853 = vmatprep.subr.bf16.mxu0 %v5022_v14 }
0x14ca   :  { %4855 = vmatpush3.bf16.msra.mxu0 %v4854_v59 }
0x1588   :  { %v3166_v33 = vpop.f32.mrb[28].mxu0 }
0x1589   :  { %v4599_v34 = vpop.f32.mrb[29].mxu0 }
0x158c   :  { %v3326_v35 = vpop.f32.mrb[30].mxu0 }
0x158d   :  { %v3331_v36 = vrot.slane %v3326_v35, 7  ;;  %v4609_v37 = vpop.f32.mrb[31].mxu0 }
0x158f   :  { %v3333_v38 = vsel %vm2154_vm15, %v3166_v33, %v3331_v36 }
0x1590   :  { %4615 = vmatmul.mubr.msk.f32.vlgmr.msra.gmra.mrb[32].mxu1 %vm770_vm12, %v3333_v38  ;;  %v3479_v40 = vpop.f32.mrb[32].mxu0 }
0x1591   :  { %v4623_v41 = vpop.f32.mrb[33].mxu0  ;;  %4632 = vmatprep.mubr.msk.f32.mxu1 %vm5021_vm11, %v5020_v15  ;;  %4840 = vmatpush3.bf16.msra.mxu1 %v4839_v57 }
0x1592   :  { %4841 = vmatprep.subr.bf16.mxu1 %v5022_v14 }
0x1663   :  { %v3406_v45 = vpop.f32.mrb[32].mxu1 }
0x1664   :  { %v3480_v44 = vadd.f32 %v3479_v40, %v3406_v45  ;;  %v4616_v47 = vpop.f32.mrb[33].mxu1 }
0x1666   :  { %v3491_v49 = vadd.f32 %v4098_v46, %v3480_v44  ;;  %v3742_v46 = vld [vmem:[%s5630_s14] sm:$0xff]  ;;  %v3743_v44 = vld [vmem:[%s5630_s14 + $0x8] sm:$0xff] }
0x1667   :  { %v4857_v47 = vpack.c.bf16 %v3743_v44, %v3742_v46 }
0x1668   :  { %v3492_v50 = vadd.f32 %v3491_v49, %v5424_v42  ;;  %v4842_v42 = vpack.c.bf16 %v4106_v60, %v4105_v43  ;;  %v3744_v49 = vld [vmem:[%s5630_s14 + $0x10] sm:$0xff]  ;;  %v3827_v60 = vld [vmem:[%s5167_s20] sm:$0xff] }
0x166a   :  { %v3498_v51 = vsel %vm3497_vm1, %v3492_v50, 0.0  ;;  %4843 = vmatpush3.bf16.msra.mxu1 %v4842_v42  ;;  %v3828_v42 = vld [vmem:[%s5167_s20 + $0x8] sm:$0xff] }
0x166b   :  { %3499 = vadd.xlane.f32.xlu1 %v3498_v51  ;;  %4856 = vmatprep.subr.bf16.mxu1 %v5022_v14 }
0x16f8   :  { %v3500_v26 = vpop.xlane.xlu1 %3499 }
0x16f9   :  { %v3501_v48 = vmul.f32 0.03125, %v3500_v26 }
0x16fb   :  { %v3502_v21 = vsub.f32 %v3492_v50, %v3501_v48  ;;  %v3745_v50 = vld [vmem:[%s5630_s14 + $0x18] sm:$0xff] }
0x16fc   :  { %v4860_v51 = vpack.c.bf16 %v3745_v50, %v3744_v49 }
0x16fd   :  { %v3503_v52 = vmul.f32 %v3502_v21, %v3502_v21 }
0x16ff   :  { %v3504_v53 = vsel %vm3497_vm1, %v3503_v52, 0.0 }
0x1700   :  { %3505 = vadd.xlane.f32.xlu0 %v3504_v53  ;;  %v4123_v53 = vld [vmem:[%s5628_s7 + $0x1] ss:$0 sm:$0xff] }
0x178d   :  { %v3506_v61 = vpop.xlane.xlu0 %3505 }
0x178e   :  { %v3507_v62 = vmul.f32 0.03125, %v3506_v61  ;;  %v3829_v61 = vld [vmem:[%s5167_s20 + $0x10] sm:$0xff] }
0x1790   :  { %v3508_v11 = vadd.f32 1e-12, %v3507_v62  ;;  %v4863_v62 = vpack.c.bf16 %v3828_v42, %v3827_v60 }
0x1792   :  { %4958 = vrsqrt.f32 %v3508_v11  ;;  %v3830_v11 = vld [vmem:[%s5167_s20 + $0x18] sm:$0xff] }
0x179c   :  { %v4959_v0 = vpop.eup %4958 }
0x179d   :  { %v3510_v1 = vmul.f32 %v4959_v0, %v3502_v21  ;;  %v4866_v0 = vpack.c.bf16 %v3830_v11, %v3829_v61 }
0x179f   :  { %v3517_v3 = vmul.f32 %v4101_v39, %v3510_v1  ;;  %v4125_v39 = vld [vmem:[%s5162_s17] ss:$0 sm:$0xff] }
0x17a1   :  { %v3524_v4 = vadd.f32 %v4102_v2, %v3517_v3 }
0x17a3   :  { %4633 = vmatmul.mubr.msk.f32.vlgmr.msra.gmra.mrb[34].mxu1 %vm357_vm9, %v3524_v4 }
0x17a4   :  { %4662 = vmatprep.mubr.msk.f32.mxu1 %vm5021_vm11, %v5020_v15  ;;  %4858 = vmatpush3.bf16.msra.mxu1 %v4857_v47 }
0x17a5   :  { %4859 = vmatprep.subr.bf16.mxu1 %v5022_v14 }
0x17a8   :  { %4861 = vmatpush3.bf16.msra.mxu1 %v4860_v51 }
0x17a9   :  { %4862 = vmatprep.subr.bf16.mxu1 %v5022_v14 }
0x1876   :  { %v3607_v55 = vpop.f32.mrb[34].mxu1 }
0x1877   :  { %v3608_v18 = vadd.f32 %v4108_v63, %v3607_v55  ;;  %v4634_v19 = vpop.f32.mrb[35].mxu1 }
0x1879   :  { %v3612_v20 = vmul.f32 0.044715, %v3608_v18  ;;  %v3611_v29 = vmul.f32 0.5, %v3608_v18 }
0x187b   :  { %v3613_v22 = vmul.f32 %v3612_v20, %v3608_v18 }
0x187d   :  { %v3614_v23 = vmul.f32 %v3613_v22, %v3608_v18 }
0x187f   :  { %v3615_v25 = vadd.f32 %v3614_v23, %v3608_v18 }
0x1881   :  { %v3616_v27 = vmul.f32 0.7978846, %v3615_v25 }
0x1883   :  { %4960 = vtanh.f32 %v3616_v27 }
0x188d   :  { %v4961_v28 = vpop.eup %4960 }
0x188e   :  { %v3618_v30 = vadd.f32 1.0, %v4961_v28 }
0x1890   :  { %v3619_v24 = vmul.f32 %v3618_v30, %v3611_v29 }
0x1892   :  { %4652 = vmatmul.mubr.msk.f32.vlgmr.msra.gmra.mrb[34].mxu0 %vm2023_vm14, %v3619_v24 }
0x1965   :  { %v3706_v32 = vpop.f32.mrb[34].mxu0 }
0x1966   :  { %v3707_v33 = vadd.f32 %v4119_v31, %v3706_v32  ;;  %v4653_v34 = vpop.f32.mrb[35].mxu0 }
0x1968   :  { %v3710_v35 = vadd.f32 %v3707_v33, %v3524_v4 }
0x196a   :  { %v3715_v36 = vsel %vm3497_vm1, %v3710_v35, 0.0 }
0x196b   :  { %3716 = vadd.xlane.f32.xlu1 %v3715_v36 }
0x19f8   :  { %v3717_v37 = vpop.xlane.xlu1 %3716 }
0x19f9   :  { %v3718_v38 = vmul.f32 0.03125, %v3717_v37 }
0x19fb   :  { %v3719_v40 = vsub.f32 %v3710_v35, %v3718_v38 }
0x19fd   :  { %v3720_v41 = vmul.f32 %v3719_v40, %v3719_v40 }
0x19ff   :  { %v3721_v45 = vsel %vm3497_vm1, %v3720_v41, 0.0 }
0x1a00   :  { %3722 = vadd.xlane.f32.xlu0 %v3721_v45 }
0x1a8d   :  { %v3723_v26 = vpop.xlane.xlu0 %3722 }
0x1a8e   :  { %v3724_v48 = vmul.f32 0.03125, %v3723_v26 }
0x1a90   :  { %v3725_v21 = vadd.f32 1e-12, %v3724_v48 }
0x1a92   :  { %4962 = vrsqrt.f32 %v3725_v21 }
0x1a9c   :  { %v4963_v52 = vpop.eup %4962 }
0x1a9d   :  { %v3727_v54 = vmul.f32 %v4963_v52, %v3719_v40 }
0x1a9f   :  { %v3734_v57 = vmul.f32 %v4123_v53, %v3727_v54 }
0x1aa1   :  { %v3741_v43 = vadd.f32 %v4124_v56, %v3734_v57 }
0x1aa3   :  { %4663 = vmatmul.mubr.msk.f32.vlgmr.msra.gmra.mrb[36].mxu1 %vm357_vm9, %v3741_v43 }
0x1aa4   :  { %4673 = vmatprep.mubr.msk.f32.mxu1 %vm5021_vm11, %v5020_v15  ;;  %4864 = vmatpush3.bf16.msra.mxu1 %v4863_v62  ;;  %v4127_v15 = vld [vmem:[%s5172_s27] ss:$0 sm:$0xff] }
0x1aa5   :  { %4865 = vmatprep.subr.bf16.mxu1 %v5022_v14 }
0x1aa8   :  { %4867 = vmatpush3.bf16.msra.mxu1 %v4866_v0 }
0x1b76   :  { %v3822_v1 = vpop.f32.mrb[36].mxu1 }
0x1b77   :  { %v3823_v2 = vadd.f32 %v4125_v39, %v3822_v1  ;;  %v4664_v3 = vpop.f32.mrb[37].mxu1 }
0x1b79   :  { %4964 = vtanh.f32 %v3823_v2 }
0x1b83   :  { %v4965_v4 = vpop.eup %4964 }
0x1b84   :  { %4674 = vmatmul.mubr.msk.f32.vlgmr.msra.gmra.mrb[38].mxu1 %vm357_vm9, %v4965_v4 }
0x1c57   :  { %v3907_v5 = vpop.f32.mrb[38].mxu1 }
0x1c58   :  { %v3908_v6 = vadd.f32 %v4127_v15, %v3907_v5  ;;  %v4675_v7 = vpop.f32.mrb[39].mxu1 }
0x1c5a   :  { %3911 = vst [vmem:[#allocation2] sm:$0x3] %v3908_v6 }
0x1c5b   :  { %4977 = shalt.err (!%p4974_p4)
}
0x1c5c   :  { %s4978_s17 = scalar_lea.hbm %s5177_s4, 32 }
0x1c5d   :  { %p4979_p5 = scmp.ne.s32.totalorder %s5177_s4, %s4978_s17  ;;  %p4982_p6 = scmp.lt.u32.totalorder %s4978_s17, %s5177_s4 }
0x1c5f   :  { %p4984_p7 = pnand %p4982_p6, %p4979_p5 }
0x1c61   :  { %4987 = shalt.err (!%p4984_p7)
}
0x1c62   :  { %3921 = dma.vmem_to_hbm [thread:$0]  %s3919_s24, 32, %s5177_s4, [#allocation3]  }
0x1c63   :  { %4988 = dma.done.wait [#allocation3], 32  }
0x1c64   :  { %4989 = vsyncadd [#allocation3], 4294967264 }
0x1c65   :  { %3925 = vsyncpa [#allocation3], 1 }

</bundles_post_ra>
